<compile_context>
chip_gen: v5e
topology: v5e:2x2
jax: 0.10.0
libtpu: 0.0.40
codegen_flags: <defaults>
</compile_context>

<pallas_src>
import math
import functools

import jax
import jax.numpy as jnp
from jax.experimental import pallas as pl
from jax.experimental.pallas import tpu as pltpu


_BN_EPS = 1e-5      # PyTorch BatchNorm2d default eps
_NORM_EPS = 1e-12   # guard against an all-zero feature map (review concern)


def _connector_term(s_ref, t_ref, w_ref, g_ref, b_ref, n_batch):
    """One connector: Conv1x1 -> BatchNorm2d (training stats) -> AttnFD loss term.

    Layout: s_ref (B, Cs, H*W), t_ref (B, Ct, H*W): channels on sublanes, spatial
    on lanes.  Only per-channel moments of y = W @ s are accumulated; the BN'd
    tensor is never materialised (cosine-identity form of the loss).
    """
    w = w_ref[...]                              # (Ct, Cs) native conv-weight layout
    ct = w.shape[0]
    hw = s_ref.shape[2]
    m_tot = float(n_batch * hw)                 # BatchNorm2d reduces over N*H*W

    sy = jnp.zeros((ct, 1), jnp.float32)
    syy = jnp.zeros((ct, 1), jnp.float32)
    syt = jnp.zeros((ct, 1), jnp.float32)
    st = jnp.zeros((ct, 1), jnp.float32)
    stt = jnp.zeros((ct, 1), jnp.float32)

    for bb in range(n_batch):                   # static unroll, B is small
        sb = s_ref[bb]                          # (Cs, HW)
        tb = t_ref[bb]                          # (Ct, HW)
        # 1x1 conv, stride 1, no bias == channel matmul on the MXU (lane-dense).
        y = jnp.dot(w, sb, preferred_element_type=jnp.float32)   # (Ct, HW)
        sy += jnp.sum(y, axis=1, keepdims=True)
        syy += jnp.sum(y * y, axis=1, keepdims=True)
        syt += jnp.sum(y * tb, axis=1, keepdims=True)
        st += jnp.sum(tb, axis=1, keepdims=True)
        stt += jnp.sum(tb * tb, axis=1, keepdims=True)

    gam = g_ref[...]                            # (Ct, 1)
    bet = b_ref[...]                            # (Ct, 1)

    # BatchNorm2d training-mode stats (biased variance over N*H*W).
    mean = sy * (1.0 / m_tot)
    var = jnp.maximum(syy * (1.0 / m_tot) - mean * mean, 0.0)
    a = gam * jax.lax.rsqrt(var + _BN_EPS)      # per-channel BN scale (EUP rsqrt)

    # ||yn||_F^2, ||t||_F^2, <yn, t> from the per-channel moments.
    yn_sq = jnp.sum(a * a * var * m_tot
                    + 2.0 * a * bet * (sy - m_tot * mean)
                    + m_tot * bet * bet)
    t_sq = jnp.sum(stt)
    yt = jnp.sum(a * (syt - mean * st) + bet * st)

    inv_yn = jax.lax.rsqrt(yn_sq + _NORM_EPS)
    inv_t = jax.lax.rsqrt(t_sq + _NORM_EPS)
    # sum((yn/||yn||_F - t/||t||_F)^2) via the cosine identity.
    d2 = (yn_sq * inv_yn * inv_yn
          + t_sq * inv_t * inv_t
          - 2.0 * yt * inv_yn * inv_t)
    return d2 / n_batch


def _distiller_kernel(*refs, n_connectors, n_batch, attn_lambda):
    """Fused kernel: all connectors' loss terms accumulated into one SMEM scalar."""
    loss_ref = refs[-1]
    total = jnp.float32(0.0)
    for j in range(n_connectors):
        s_ref, t_ref, w_ref, g_ref, b_ref = refs[5 * j:5 * j + 5]
        total = total + _connector_term(s_ref, t_ref, w_ref, g_ref, b_ref, n_batch)
    loss_ref[0] = total * attn_lambda


def distiller_attnfd_loss(s_attens, t_attens, connector_params, attn_lambda):
    """All Connectors[3:] (Conv1x1 + BN) + loss terms in a SINGLE pallas_call."""
    n = len(s_attens)
    batch = s_attens[0].shape[0]

    inputs = []
    in_specs = []
    for j in range(n):
        s = s_attens[j]
        t = t_attens[j]
        w, gamma, beta = connector_params[j]
        b, cs, h, wd = s.shape
        ct = t.shape[1]
        hw = h * wd
        # NCHW -> (B, C, H*W): pure minor-dim merge, no transpose, no extra traffic.
        inputs += [
            s.reshape(b, cs, hw),
            t.reshape(b, ct, hw),
            w.astype(jnp.float32),                       # (Ct, Cs), matmul-ready
            gamma.reshape(ct, 1).astype(jnp.float32),
            beta.reshape(ct, 1).astype(jnp.float32),
        ]
        in_specs += [
            pl.BlockSpec((b, cs, hw), lambda: (0, 0, 0)),
            pl.BlockSpec((b, ct, hw), lambda: (0, 0, 0)),
            pl.BlockSpec((ct, cs), lambda: (0, 0)),
            pl.BlockSpec((ct, 1), lambda: (0, 0)),
            pl.BlockSpec((ct, 1), lambda: (0, 0)),
        ]

    kernel = functools.partial(_distiller_kernel, n_connectors=n, n_batch=batch,
                               attn_lambda=float(attn_lambda))
    # TODO(synk): for production-sized attention maps (feature bytes beyond a few
    # MiB) add an M-tiled grid reusing the same per-channel moment accumulators in
    # VMEM scratch with a pl.when finalize, mark the tile axis "parallel" for v7x
    # megacore, and set vmem_limit_bytes per generation; demo shapes fit whole.
    loss = pl.pallas_call(
        kernel,
        out_shape=jax.ShapeDtypeStruct((1,), jnp.float32),
        in_specs=in_specs,
        out_specs=pl.BlockSpec(memory_space=pltpu.MemorySpace.SMEM),
    )(*inputs)
    return loss[0]


def build_feature_connector_params(key, t_channel, s_channel):
    """Mirror of build_feature_connector init: Conv2d(s->t, 1x1, no bias) + BN2d.

    The conv weight is kept in its native (Ct, Cs) layout, which is exactly the
    LHS of the in-kernel `W @ s` matmul (no per-call transpose needed).
    """
    n = 1 * 1 * t_channel
    w = jax.random.normal(key, (t_channel, s_channel), dtype=jnp.float32) \
        * math.sqrt(2.0 / n)                            # normal_(0, sqrt(2/n))
    # TODO(synk): BatchNorm2d running_mean / running_var momentum updates (stateful
    # training-time side effect) are not emulated; they do not affect the loss.
    gamma = jnp.ones((t_channel,), dtype=jnp.float32)   # BN weight.fill_(1)
    beta = jnp.zeros((t_channel,), dtype=jnp.float32)   # BN bias.zero_()
    return w, gamma, beta


def distiller_forward(s_out, t_attens, s_attens, connector_params, attn_lambda):
    """Distiller.forward: only Connectors[3:] are used; the attention lists here
    are already the [i-3] slices paired with Connectors[3:].  All connector loss
    terms are computed inside one fused Pallas kernel."""
    loss_attnfd = distiller_attnfd_loss(s_attens, t_attens, connector_params,
                                        attn_lambda)
    return s_out, loss_attnfd


if __name__ == "__main__":
    key = jax.random.PRNGKey(0)

    # Synthetic network config (small): 6 feature stages, loop runs i = 3, 4, 5.
    B = 2
    num_classes = 10
    t_channels = [8, 8, 16, 16, 32, 32]
    s_channels = [4, 4, 8, 8, 16, 16]
    spatials = [16, 8, 4]                 # H = W for attens[0], [1], [2]
    attn_lambda = 0.5

    keys = jax.random.split(key, 16)
    x = jax.random.normal(keys[0], (B, 3, 32, 32), dtype=jnp.float32)  # model input

    # Stubbed extract_feature outputs (deterministic synthetic attention maps).
    t_attens, s_attens = [], []
    for j, hw in enumerate(spatials):
        i = j + 3
        t_attens.append(jax.random.normal(
            keys[1 + 2 * j], (B, t_channels[i], hw, hw), dtype=jnp.float32))
        s_attens.append(jax.random.normal(
            keys[2 + 2 * j], (B, s_channels[i], hw, hw), dtype=jnp.float32))
    s_out = jax.random.normal(keys[10], (B, num_classes), dtype=jnp.float32)

    # Connectors[3..5] parameters (the only ones the forward pass touches).
    connector_params = []
    for j in range(len(spatials)):
        i = j + 3
        connector_params.append(
            build_feature_connector_params(keys[11 + j], t_channels[i], s_channels[i]))

    out, loss = distiller_forward(s_out, t_attens, s_attens,
                                  connector_params, attn_lambda)
    jax.block_until_ready(out)
    jax.block_until_ready(loss)

    assert out.shape == (B, num_classes)
    assert loss.shape == () and jnp.isfinite(loss)
    print("KERNEL_OK")
</pallas_src>

<mosaic_0001>
module attributes {stable_mosaic.version = 11 : i64} {
  func.func @_distiller_kernel(%arg0: memref<2x8x256xf32, #tpu.memory_space<vmem>>, %arg1: memref<2x16x256xf32, #tpu.memory_space<vmem>>, %arg2: memref<16x8xf32, #tpu.memory_space<vmem>>, %arg3: memref<16x1xf32, #tpu.memory_space<vmem>>, %arg4: memref<16x1xf32, #tpu.memory_space<vmem>>, %arg5: memref<2x16x64xf32, #tpu.memory_space<vmem>>, %arg6: memref<2x32x64xf32, #tpu.memory_space<vmem>>, %arg7: memref<32x16xf32, #tpu.memory_space<vmem>>, %arg8: memref<32x1xf32, #tpu.memory_space<vmem>>, %arg9: memref<32x1xf32, #tpu.memory_space<vmem>>, %arg10: memref<2x16x16xf32, #tpu.memory_space<vmem>>, %arg11: memref<2x32x16xf32, #tpu.memory_space<vmem>>, %arg12: memref<32x16xf32, #tpu.memory_space<vmem>>, %arg13: memref<32x1xf32, #tpu.memory_space<vmem>>, %arg14: memref<32x1xf32, #tpu.memory_space<vmem>>, %arg15: memref<1xf32, #tpu.memory_space<smem>>) attributes {dimension_semantics = [], scalar_prefetch = 0 : i64, scratch_operands = 0 : i64, tpu.core_type = #tpu.core_type<tc>} {
    %c0 = arith.constant 0 : index
    %c0_0 = arith.constant 0 : index
    %0 = vector.load %arg2[%c0, %c0_0] : memref<16x8xf32, #tpu.memory_space<vmem>>, vector<16x8xf32>
    %cst = arith.constant 0.000000e+00 : f32
    %1 = vector.broadcast %cst : f32 to vector<16x1xf32>
    %cst_1 = arith.constant 0.000000e+00 : f32
    %2 = vector.broadcast %cst_1 : f32 to vector<16x1xf32>
    %cst_2 = arith.constant 0.000000e+00 : f32
    %3 = vector.broadcast %cst_2 : f32 to vector<16x1xf32>
    %cst_3 = arith.constant 0.000000e+00 : f32
    %4 = vector.broadcast %cst_3 : f32 to vector<16x1xf32>
    %cst_4 = arith.constant 0.000000e+00 : f32
    %5 = vector.broadcast %cst_4 : f32 to vector<16x1xf32>
    %c0_5 = arith.constant 0 : index
    %c0_6 = arith.constant 0 : index
    %c0_7 = arith.constant 0 : index
    %6 = vector.load %arg0[%c0_5, %c0_6, %c0_7] : memref<2x8x256xf32, #tpu.memory_space<vmem>>, vector<1x8x256xf32>
    %7 = vector.shape_cast %6 : vector<1x8x256xf32> to vector<8x256xf32>
    %c0_8 = arith.constant 0 : index
    %c0_9 = arith.constant 0 : index
    %c0_10 = arith.constant 0 : index
    %8 = vector.load %arg1[%c0_8, %c0_9, %c0_10] : memref<2x16x256xf32, #tpu.memory_space<vmem>>, vector<1x16x256xf32>
    %9 = vector.shape_cast %8 : vector<1x16x256xf32> to vector<16x256xf32>
    %cst_11 = arith.constant dense<0.000000e+00> : vector<16x256xf32>
    %10 = tpu.matmul %0, %7, %cst_11 {dimension_numbers = #tpu.dot_dimension_numbers<[1], [0], [0], [1], [0, 0, 1, 1], [], []>} : vector<16x8xf32>, vector<8x256xf32>, vector<16x256xf32> -> vector<16x256xf32>
    %cst_12 = arith.constant dense<0.000000e+00> : vector<16xf32>
    %11 = vector.multi_reduction <add>, %10, %cst_12 [1] : vector<16x256xf32> to vector<16xf32>
    %12 = vector.shape_cast %11 : vector<16xf32> to vector<16x1xf32>
    %13 = arith.addf %1, %12 : vector<16x1xf32>
    %14 = arith.mulf %10, %10 : vector<16x256xf32>
    %cst_13 = arith.constant dense<0.000000e+00> : vector<16xf32>
    %15 = vector.multi_reduction <add>, %14, %cst_13 [1] : vector<16x256xf32> to vector<16xf32>
    %16 = vector.shape_cast %15 : vector<16xf32> to vector<16x1xf32>
    %17 = arith.addf %2, %16 : vector<16x1xf32>
    %18 = arith.mulf %10, %9 : vector<16x256xf32>
    %cst_14 = arith.constant dense<0.000000e+00> : vector<16xf32>
    %19 = vector.multi_reduction <add>, %18, %cst_14 [1] : vector<16x256xf32> to vector<16xf32>
    %20 = vector.shape_cast %19 : vector<16xf32> to vector<16x1xf32>
    %21 = arith.addf %3, %20 : vector<16x1xf32>
    %cst_15 = arith.constant dense<0.000000e+00> : vector<16xf32>
    %22 = vector.multi_reduction <add>, %9, %cst_15 [1] : vector<16x256xf32> to vector<16xf32>
    %23 = vector.shape_cast %22 : vector<16xf32> to vector<16x1xf32>
    %24 = arith.addf %4, %23 : vector<16x1xf32>
    %25 = arith.mulf %9, %9 : vector<16x256xf32>
    %cst_16 = arith.constant dense<0.000000e+00> : vector<16xf32>
    %26 = vector.multi_reduction <add>, %25, %cst_16 [1] : vector<16x256xf32> to vector<16xf32>
    %27 = vector.shape_cast %26 : vector<16xf32> to vector<16x1xf32>
    %28 = arith.addf %5, %27 : vector<16x1xf32>
    %c1 = arith.constant 1 : index
    %c0_17 = arith.constant 0 : index
    %c0_18 = arith.constant 0 : index
    %29 = vector.load %arg0[%c1, %c0_17, %c0_18] : memref<2x8x256xf32, #tpu.memory_space<vmem>>, vector<1x8x256xf32>
    %30 = vector.shape_cast %29 : vector<1x8x256xf32> to vector<8x256xf32>
    %c1_19 = arith.constant 1 : index
    %c0_20 = arith.constant 0 : index
    %c0_21 = arith.constant 0 : index
    %31 = vector.load %arg1[%c1_19, %c0_20, %c0_21] : memref<2x16x256xf32, #tpu.memory_space<vmem>>, vector<1x16x256xf32>
    %32 = vector.shape_cast %31 : vector<1x16x256xf32> to vector<16x256xf32>
    %cst_22 = arith.constant dense<0.000000e+00> : vector<16x256xf32>
    %33 = tpu.matmul %0, %30, %cst_22 {dimension_numbers = #tpu.dot_dimension_numbers<[1], [0], [0], [1], [0, 0, 1, 1], [], []>} : vector<16x8xf32>, vector<8x256xf32>, vector<16x256xf32> -> vector<16x256xf32>
    %cst_23 = arith.constant dense<0.000000e+00> : vector<16xf32>
    %34 = vector.multi_reduction <add>, %33, %cst_23 [1] : vector<16x256xf32> to vector<16xf32>
    %35 = vector.shape_cast %34 : vector<16xf32> to vector<16x1xf32>
    %36 = arith.addf %13, %35 : vector<16x1xf32>
    %37 = arith.mulf %33, %33 : vector<16x256xf32>
    %cst_24 = arith.constant dense<0.000000e+00> : vector<16xf32>
    %38 = vector.multi_reduction <add>, %37, %cst_24 [1] : vector<16x256xf32> to vector<16xf32>
    %39 = vector.shape_cast %38 : vector<16xf32> to vector<16x1xf32>
    %40 = arith.addf %17, %39 : vector<16x1xf32>
    %41 = arith.mulf %33, %32 : vector<16x256xf32>
    %cst_25 = arith.constant dense<0.000000e+00> : vector<16xf32>
    %42 = vector.multi_reduction <add>, %41, %cst_25 [1] : vector<16x256xf32> to vector<16xf32>
    %43 = vector.shape_cast %42 : vector<16xf32> to vector<16x1xf32>
    %44 = arith.addf %21, %43 : vector<16x1xf32>
    %cst_26 = arith.constant dense<0.000000e+00> : vector<16xf32>
    %45 = vector.multi_reduction <add>, %32, %cst_26 [1] : vector<16x256xf32> to vector<16xf32>
    %46 = vector.shape_cast %45 : vector<16xf32> to vector<16x1xf32>
    %47 = arith.addf %24, %46 : vector<16x1xf32>
    %48 = arith.mulf %32, %32 : vector<16x256xf32>
    %cst_27 = arith.constant dense<0.000000e+00> : vector<16xf32>
    %49 = vector.multi_reduction <add>, %48, %cst_27 [1] : vector<16x256xf32> to vector<16xf32>
    %50 = vector.shape_cast %49 : vector<16xf32> to vector<16x1xf32>
    %51 = arith.addf %28, %50 : vector<16x1xf32>
    %c0_28 = arith.constant 0 : index
    %c0_29 = arith.constant 0 : index
    %52 = vector.load %arg3[%c0_28, %c0_29] : memref<16x1xf32, #tpu.memory_space<vmem>>, vector<16x1xf32>
    %c0_30 = arith.constant 0 : index
    %c0_31 = arith.constant 0 : index
    %53 = vector.load %arg4[%c0_30, %c0_31] : memref<16x1xf32, #tpu.memory_space<vmem>>, vector<16x1xf32>
    %cst_32 = arith.constant 0.001953125 : f32
    %54 = vector.broadcast %cst_32 : f32 to vector<16x1xf32>
    %55 = arith.mulf %36, %54 : vector<16x1xf32>
    %cst_33 = arith.constant 0.001953125 : f32
    %56 = vector.broadcast %cst_33 : f32 to vector<16x1xf32>
    %57 = arith.mulf %40, %56 : vector<16x1xf32>
    %58 = arith.mulf %55, %55 : vector<16x1xf32>
    %59 = arith.subf %57, %58 : vector<16x1xf32>
    %cst_34 = arith.constant 0.000000e+00 : f32
    %60 = vector.broadcast %cst_34 : f32 to vector<16x1xf32>
    %61 = arith.maximumf %59, %60 : vector<16x1xf32>
    %cst_35 = arith.constant 9.99999974E-6 : f32
    %62 = vector.broadcast %cst_35 : f32 to vector<16x1xf32>
    %63 = arith.addf %61, %62 : vector<16x1xf32>
    %64 = math.rsqrt %63 : vector<16x1xf32>
    %65 = arith.mulf %52, %64 : vector<16x1xf32>
    %66 = arith.mulf %65, %65 : vector<16x1xf32>
    %67 = arith.mulf %66, %61 : vector<16x1xf32>
    %cst_36 = arith.constant 5.120000e+02 : f32
    %68 = vector.broadcast %cst_36 : f32 to vector<16x1xf32>
    %69 = arith.mulf %67, %68 : vector<16x1xf32>
    %cst_37 = arith.constant 2.000000e+00 : f32
    %70 = vector.broadcast %cst_37 : f32 to vector<16x1xf32>
    %71 = arith.mulf %70, %65 : vector<16x1xf32>
    %72 = arith.mulf %71, %53 : vector<16x1xf32>
    %cst_38 = arith.constant 5.120000e+02 : f32
    %73 = vector.broadcast %cst_38 : f32 to vector<16x1xf32>
    %74 = arith.mulf %73, %55 : vector<16x1xf32>
    %75 = arith.subf %36, %74 : vector<16x1xf32>
    %76 = arith.mulf %72, %75 : vector<16x1xf32>
    %77 = arith.addf %69, %76 : vector<16x1xf32>
    %cst_39 = arith.constant 5.120000e+02 : f32
    %78 = vector.broadcast %cst_39 : f32 to vector<16x1xf32>
    %79 = arith.mulf %78, %53 : vector<16x1xf32>
    %80 = arith.mulf %79, %53 : vector<16x1xf32>
    %81 = arith.addf %77, %80 : vector<16x1xf32>
    %82 = vector.shape_cast %81 : vector<16x1xf32> to vector<1x16x1xf32>
    %cst_40 = arith.constant dense<0.000000e+00> : vector<1xf32>
    %83 = vector.multi_reduction <add>, %82, %cst_40 [1, 2] : vector<1x16x1xf32> to vector<1xf32>
    %84 = vector.shape_cast %83 : vector<1xf32> to vector<1x1x1xf32>
    %85 = vector.extract %84[0, 0, 0] : f32 from vector<1x1x1xf32>
    %86 = vector.shape_cast %51 : vector<16x1xf32> to vector<1x16x1xf32>
    %cst_41 = arith.constant dense<0.000000e+00> : vector<1xf32>
    %87 = vector.multi_reduction <add>, %86, %cst_41 [1, 2] : vector<1x16x1xf32> to vector<1xf32>
    %88 = vector.shape_cast %87 : vector<1xf32> to vector<1x1x1xf32>
    %89 = vector.extract %88[0, 0, 0] : f32 from vector<1x1x1xf32>
    %90 = arith.mulf %55, %47 : vector<16x1xf32>
    %91 = arith.subf %44, %90 : vector<16x1xf32>
    %92 = arith.mulf %65, %91 : vector<16x1xf32>
    %93 = arith.mulf %53, %47 : vector<16x1xf32>
    %94 = arith.addf %92, %93 : vector<16x1xf32>
    %95 = vector.shape_cast %94 : vector<16x1xf32> to vector<1x16x1xf32>
    %cst_42 = arith.constant dense<0.000000e+00> : vector<1xf32>
    %96 = vector.multi_reduction <add>, %95, %cst_42 [1, 2] : vector<1x16x1xf32> to vector<1xf32>
    %97 = vector.shape_cast %96 : vector<1xf32> to vector<1x1x1xf32>
    %98 = vector.extract %97[0, 0, 0] : f32 from vector<1x1x1xf32>
    %cst_43 = arith.constant 9.99999996E-13 : f32
    %99 = arith.addf %85, %cst_43 : f32
    %100 = math.rsqrt %99 : f32
    %cst_44 = arith.constant 9.99999996E-13 : f32
    %101 = arith.addf %89, %cst_44 : f32
    %102 = math.rsqrt %101 : f32
    %103 = arith.mulf %85, %100 : f32
    %104 = arith.mulf %103, %100 : f32
    %105 = arith.mulf %89, %102 : f32
    %106 = arith.mulf %105, %102 : f32
    %107 = arith.addf %104, %106 : f32
    %cst_45 = arith.constant 2.000000e+00 : f32
    %108 = arith.mulf %cst_45, %98 : f32
    %109 = arith.mulf %108, %100 : f32
    %110 = arith.mulf %109, %102 : f32
    %111 = arith.subf %107, %110 : f32
    %cst_46 = arith.constant 2.000000e+00 : f32
    %112 = arith.divf %111, %cst_46 : f32
    %cst_47 = arith.constant 0.000000e+00 : f32
    %113 = arith.addf %cst_47, %112 : f32
    %c0_48 = arith.constant 0 : index
    %c0_49 = arith.constant 0 : index
    %114 = vector.load %arg7[%c0_48, %c0_49] : memref<32x16xf32, #tpu.memory_space<vmem>>, vector<32x16xf32>
    %cst_50 = arith.constant 0.000000e+00 : f32
    %115 = vector.broadcast %cst_50 : f32 to vector<32x1xf32>
    %cst_51 = arith.constant 0.000000e+00 : f32
    %116 = vector.broadcast %cst_51 : f32 to vector<32x1xf32>
    %cst_52 = arith.constant 0.000000e+00 : f32
    %117 = vector.broadcast %cst_52 : f32 to vector<32x1xf32>
    %cst_53 = arith.constant 0.000000e+00 : f32
    %118 = vector.broadcast %cst_53 : f32 to vector<32x1xf32>
    %cst_54 = arith.constant 0.000000e+00 : f32
    %119 = vector.broadcast %cst_54 : f32 to vector<32x1xf32>
    %c0_55 = arith.constant 0 : index
    %c0_56 = arith.constant 0 : index
    %c0_57 = arith.constant 0 : index
    %120 = vector.load %arg5[%c0_55, %c0_56, %c0_57] : memref<2x16x64xf32, #tpu.memory_space<vmem>>, vector<1x16x64xf32>
    %121 = vector.shape_cast %120 : vector<1x16x64xf32> to vector<16x64xf32>
    %c0_58 = arith.constant 0 : index
    %c0_59 = arith.constant 0 : index
    %c0_60 = arith.constant 0 : index
    %122 = vector.load %arg6[%c0_58, %c0_59, %c0_60] : memref<2x32x64xf32, #tpu.memory_space<vmem>>, vector<1x32x64xf32>
    %123 = vector.shape_cast %122 : vector<1x32x64xf32> to vector<32x64xf32>
    %cst_61 = arith.constant dense<0.000000e+00> : vector<32x64xf32>
    %124 = tpu.matmul %114, %121, %cst_61 {dimension_numbers = #tpu.dot_dimension_numbers<[1], [0], [0], [1], [0, 0, 1, 1], [], []>} : vector<32x16xf32>, vector<16x64xf32>, vector<32x64xf32> -> vector<32x64xf32>
    %cst_62 = arith.constant dense<0.000000e+00> : vector<32xf32>
    %125 = vector.multi_reduction <add>, %124, %cst_62 [1] : vector<32x64xf32> to vector<32xf32>
    %126 = vector.shape_cast %125 : vector<32xf32> to vector<32x1xf32>
    %127 = arith.addf %115, %126 : vector<32x1xf32>
    %128 = arith.mulf %124, %124 : vector<32x64xf32>
    %cst_63 = arith.constant dense<0.000000e+00> : vector<32xf32>
    %129 = vector.multi_reduction <add>, %128, %cst_63 [1] : vector<32x64xf32> to vector<32xf32>
    %130 = vector.shape_cast %129 : vector<32xf32> to vector<32x1xf32>
    %131 = arith.addf %116, %130 : vector<32x1xf32>
    %132 = arith.mulf %124, %123 : vector<32x64xf32>
    %cst_64 = arith.constant dense<0.000000e+00> : vector<32xf32>
    %133 = vector.multi_reduction <add>, %132, %cst_64 [1] : vector<32x64xf32> to vector<32xf32>
    %134 = vector.shape_cast %133 : vector<32xf32> to vector<32x1xf32>
    %135 = arith.addf %117, %134 : vector<32x1xf32>
    %cst_65 = arith.constant dense<0.000000e+00> : vector<32xf32>
    %136 = vector.multi_reduction <add>, %123, %cst_65 [1] : vector<32x64xf32> to vector<32xf32>
    %137 = vector.shape_cast %136 : vector<32xf32> to vector<32x1xf32>
    %138 = arith.addf %118, %137 : vector<32x1xf32>
    %139 = arith.mulf %123, %123 : vector<32x64xf32>
    %cst_66 = arith.constant dense<0.000000e+00> : vector<32xf32>
    %140 = vector.multi_reduction <add>, %139, %cst_66 [1] : vector<32x64xf32> to vector<32xf32>
    %141 = vector.shape_cast %140 : vector<32xf32> to vector<32x1xf32>
    %142 = arith.addf %119, %141 : vector<32x1xf32>
    %c1_67 = arith.constant 1 : index
    %c0_68 = arith.constant 0 : index
    %c0_69 = arith.constant 0 : index
    %143 = vector.load %arg5[%c1_67, %c0_68, %c0_69] : memref<2x16x64xf32, #tpu.memory_space<vmem>>, vector<1x16x64xf32>
    %144 = vector.shape_cast %143 : vector<1x16x64xf32> to vector<16x64xf32>
    %c1_70 = arith.constant 1 : index
    %c0_71 = arith.constant 0 : index
    %c0_72 = arith.constant 0 : index
    %145 = vector.load %arg6[%c1_70, %c0_71, %c0_72] : memref<2x32x64xf32, #tpu.memory_space<vmem>>, vector<1x32x64xf32>
    %146 = vector.shape_cast %145 : vector<1x32x64xf32> to vector<32x64xf32>
    %cst_73 = arith.constant dense<0.000000e+00> : vector<32x64xf32>
    %147 = tpu.matmul %114, %144, %cst_73 {dimension_numbers = #tpu.dot_dimension_numbers<[1], [0], [0], [1], [0, 0, 1, 1], [], []>} : vector<32x16xf32>, vector<16x64xf32>, vector<32x64xf32> -> vector<32x64xf32>
    %cst_74 = arith.constant dense<0.000000e+00> : vector<32xf32>
    %148 = vector.multi_reduction <add>, %147, %cst_74 [1] : vector<32x64xf32> to vector<32xf32>
    %149 = vector.shape_cast %148 : vector<32xf32> to vector<32x1xf32>
    %150 = arith.addf %127, %149 : vector<32x1xf32>
    %151 = arith.mulf %147, %147 : vector<32x64xf32>
    %cst_75 = arith.constant dense<0.000000e+00> : vector<32xf32>
    %152 = vector.multi_reduction <add>, %151, %cst_75 [1] : vector<32x64xf32> to vector<32xf32>
    %153 = vector.shape_cast %152 : vector<32xf32> to vector<32x1xf32>
    %154 = arith.addf %131, %153 : vector<32x1xf32>
    %155 = arith.mulf %147, %146 : vector<32x64xf32>
    %cst_76 = arith.constant dense<0.000000e+00> : vector<32xf32>
    %156 = vector.multi_reduction <add>, %155, %cst_76 [1] : vector<32x64xf32> to vector<32xf32>
    %157 = vector.shape_cast %156 : vector<32xf32> to vector<32x1xf32>
    %158 = arith.addf %135, %157 : vector<32x1xf32>
    %cst_77 = arith.constant dense<0.000000e+00> : vector<32xf32>
    %159 = vector.multi_reduction <add>, %146, %cst_77 [1] : vector<32x64xf32> to vector<32xf32>
    %160 = vector.shape_cast %159 : vector<32xf32> to vector<32x1xf32>
    %161 = arith.addf %138, %160 : vector<32x1xf32>
    %162 = arith.mulf %146, %146 : vector<32x64xf32>
    %cst_78 = arith.constant dense<0.000000e+00> : vector<32xf32>
    %163 = vector.multi_reduction <add>, %162, %cst_78 [1] : vector<32x64xf32> to vector<32xf32>
    %164 = vector.shape_cast %163 : vector<32xf32> to vector<32x1xf32>
    %165 = arith.addf %142, %164 : vector<32x1xf32>
    %c0_79 = arith.constant 0 : index
    %c0_80 = arith.constant 0 : index
    %166 = vector.load %arg8[%c0_79, %c0_80] : memref<32x1xf32, #tpu.memory_space<vmem>>, vector<32x1xf32>
    %c0_81 = arith.constant 0 : index
    %c0_82 = arith.constant 0 : index
    %167 = vector.load %arg9[%c0_81, %c0_82] : memref<32x1xf32, #tpu.memory_space<vmem>>, vector<32x1xf32>
    %cst_83 = arith.constant 7.812500e-03 : f32
    %168 = vector.broadcast %cst_83 : f32 to vector<32x1xf32>
    %169 = arith.mulf %150, %168 : vector<32x1xf32>
    %cst_84 = arith.constant 7.812500e-03 : f32
    %170 = vector.broadcast %cst_84 : f32 to vector<32x1xf32>
    %171 = arith.mulf %154, %170 : vector<32x1xf32>
    %172 = arith.mulf %169, %169 : vector<32x1xf32>
    %173 = arith.subf %171, %172 : vector<32x1xf32>
    %cst_85 = arith.constant 0.000000e+00 : f32
    %174 = vector.broadcast %cst_85 : f32 to vector<32x1xf32>
    %175 = arith.maximumf %173, %174 : vector<32x1xf32>
    %cst_86 = arith.constant 9.99999974E-6 : f32
    %176 = vector.broadcast %cst_86 : f32 to vector<32x1xf32>
    %177 = arith.addf %175, %176 : vector<32x1xf32>
    %178 = math.rsqrt %177 : vector<32x1xf32>
    %179 = arith.mulf %166, %178 : vector<32x1xf32>
    %180 = arith.mulf %179, %179 : vector<32x1xf32>
    %181 = arith.mulf %180, %175 : vector<32x1xf32>
    %cst_87 = arith.constant 1.280000e+02 : f32
    %182 = vector.broadcast %cst_87 : f32 to vector<32x1xf32>
    %183 = arith.mulf %181, %182 : vector<32x1xf32>
    %cst_88 = arith.constant 2.000000e+00 : f32
    %184 = vector.broadcast %cst_88 : f32 to vector<32x1xf32>
    %185 = arith.mulf %184, %179 : vector<32x1xf32>
    %186 = arith.mulf %185, %167 : vector<32x1xf32>
    %cst_89 = arith.constant 1.280000e+02 : f32
    %187 = vector.broadcast %cst_89 : f32 to vector<32x1xf32>
    %188 = arith.mulf %187, %169 : vector<32x1xf32>
    %189 = arith.subf %150, %188 : vector<32x1xf32>
    %190 = arith.mulf %186, %189 : vector<32x1xf32>
    %191 = arith.addf %183, %190 : vector<32x1xf32>
    %cst_90 = arith.constant 1.280000e+02 : f32
    %192 = vector.broadcast %cst_90 : f32 to vector<32x1xf32>
    %193 = arith.mulf %192, %167 : vector<32x1xf32>
    %194 = arith.mulf %193, %167 : vector<32x1xf32>
    %195 = arith.addf %191, %194 : vector<32x1xf32>
    %196 = vector.shape_cast %195 : vector<32x1xf32> to vector<1x32x1xf32>
    %cst_91 = arith.constant dense<0.000000e+00> : vector<1xf32>
    %197 = vector.multi_reduction <add>, %196, %cst_91 [1, 2] : vector<1x32x1xf32> to vector<1xf32>
    %198 = vector.shape_cast %197 : vector<1xf32> to vector<1x1x1xf32>
    %199 = vector.extract %198[0, 0, 0] : f32 from vector<1x1x1xf32>
    %200 = vector.shape_cast %165 : vector<32x1xf32> to vector<1x32x1xf32>
    %cst_92 = arith.constant dense<0.000000e+00> : vector<1xf32>
    %201 = vector.multi_reduction <add>, %200, %cst_92 [1, 2] : vector<1x32x1xf32> to vector<1xf32>
    %202 = vector.shape_cast %201 : vector<1xf32> to vector<1x1x1xf32>
    %203 = vector.extract %202[0, 0, 0] : f32 from vector<1x1x1xf32>
    %204 = arith.mulf %169, %161 : vector<32x1xf32>
    %205 = arith.subf %158, %204 : vector<32x1xf32>
    %206 = arith.mulf %179, %205 : vector<32x1xf32>
    %207 = arith.mulf %167, %161 : vector<32x1xf32>
    %208 = arith.addf %206, %207 : vector<32x1xf32>
    %209 = vector.shape_cast %208 : vector<32x1xf32> to vector<1x32x1xf32>
    %cst_93 = arith.constant dense<0.000000e+00> : vector<1xf32>
    %210 = vector.multi_reduction <add>, %209, %cst_93 [1, 2] : vector<1x32x1xf32> to vector<1xf32>
    %211 = vector.shape_cast %210 : vector<1xf32> to vector<1x1x1xf32>
    %212 = vector.extract %211[0, 0, 0] : f32 from vector<1x1x1xf32>
    %cst_94 = arith.constant 9.99999996E-13 : f32
    %213 = arith.addf %199, %cst_94 : f32
    %214 = math.rsqrt %213 : f32
    %cst_95 = arith.constant 9.99999996E-13 : f32
    %215 = arith.addf %203, %cst_95 : f32
    %216 = math.rsqrt %215 : f32
    %217 = arith.mulf %199, %214 : f32
    %218 = arith.mulf %217, %214 : f32
    %219 = arith.mulf %203, %216 : f32
    %220 = arith.mulf %219, %216 : f32
    %221 = arith.addf %218, %220 : f32
    %cst_96 = arith.constant 2.000000e+00 : f32
    %222 = arith.mulf %cst_96, %212 : f32
    %223 = arith.mulf %222, %214 : f32
    %224 = arith.mulf %223, %216 : f32
    %225 = arith.subf %221, %224 : f32
    %cst_97 = arith.constant 2.000000e+00 : f32
    %226 = arith.divf %225, %cst_97 : f32
    %227 = arith.addf %113, %226 : f32
    %c0_98 = arith.constant 0 : index
    %c0_99 = arith.constant 0 : index
    %228 = vector.load %arg12[%c0_98, %c0_99] : memref<32x16xf32, #tpu.memory_space<vmem>>, vector<32x16xf32>
    %cst_100 = arith.constant 0.000000e+00 : f32
    %229 = vector.broadcast %cst_100 : f32 to vector<32x1xf32>
    %cst_101 = arith.constant 0.000000e+00 : f32
    %230 = vector.broadcast %cst_101 : f32 to vector<32x1xf32>
    %cst_102 = arith.constant 0.000000e+00 : f32
    %231 = vector.broadcast %cst_102 : f32 to vector<32x1xf32>
    %cst_103 = arith.constant 0.000000e+00 : f32
    %232 = vector.broadcast %cst_103 : f32 to vector<32x1xf32>
    %cst_104 = arith.constant 0.000000e+00 : f32
    %233 = vector.broadcast %cst_104 : f32 to vector<32x1xf32>
    %c0_105 = arith.constant 0 : index
    %c0_106 = arith.constant 0 : index
    %c0_107 = arith.constant 0 : index
    %234 = vector.load %arg10[%c0_105, %c0_106, %c0_107] : memref<2x16x16xf32, #tpu.memory_space<vmem>>, vector<1x16x16xf32>
    %235 = vector.shape_cast %234 : vector<1x16x16xf32> to vector<16x16xf32>
    %c0_108 = arith.constant 0 : index
    %c0_109 = arith.constant 0 : index
    %c0_110 = arith.constant 0 : index
    %236 = vector.load %arg11[%c0_108, %c0_109, %c0_110] : memref<2x32x16xf32, #tpu.memory_space<vmem>>, vector<1x32x16xf32>
    %237 = vector.shape_cast %236 : vector<1x32x16xf32> to vector<32x16xf32>
    %cst_111 = arith.constant dense<0.000000e+00> : vector<32x16xf32>
    %238 = tpu.matmul %228, %235, %cst_111 {dimension_numbers = #tpu.dot_dimension_numbers<[1], [0], [0], [1], [0, 0, 1, 1], [], []>} : vector<32x16xf32>, vector<16x16xf32>, vector<32x16xf32> -> vector<32x16xf32>
    %cst_112 = arith.constant dense<0.000000e+00> : vector<32xf32>
    %239 = vector.multi_reduction <add>, %238, %cst_112 [1] : vector<32x16xf32> to vector<32xf32>
    %240 = vector.shape_cast %239 : vector<32xf32> to vector<32x1xf32>
    %241 = arith.addf %229, %240 : vector<32x1xf32>
    %242 = arith.mulf %238, %238 : vector<32x16xf32>
    %cst_113 = arith.constant dense<0.000000e+00> : vector<32xf32>
    %243 = vector.multi_reduction <add>, %242, %cst_113 [1] : vector<32x16xf32> to vector<32xf32>
    %244 = vector.shape_cast %243 : vector<32xf32> to vector<32x1xf32>
    %245 = arith.addf %230, %244 : vector<32x1xf32>
    %246 = arith.mulf %238, %237 : vector<32x16xf32>
    %cst_114 = arith.constant dense<0.000000e+00> : vector<32xf32>
    %247 = vector.multi_reduction <add>, %246, %cst_114 [1] : vector<32x16xf32> to vector<32xf32>
    %248 = vector.shape_cast %247 : vector<32xf32> to vector<32x1xf32>
    %249 = arith.addf %231, %248 : vector<32x1xf32>
    %cst_115 = arith.constant dense<0.000000e+00> : vector<32xf32>
    %250 = vector.multi_reduction <add>, %237, %cst_115 [1] : vector<32x16xf32> to vector<32xf32>
    %251 = vector.shape_cast %250 : vector<32xf32> to vector<32x1xf32>
    %252 = arith.addf %232, %251 : vector<32x1xf32>
    %253 = arith.mulf %237, %237 : vector<32x16xf32>
    %cst_116 = arith.constant dense<0.000000e+00> : vector<32xf32>
    %254 = vector.multi_reduction <add>, %253, %cst_116 [1] : vector<32x16xf32> to vector<32xf32>
    %255 = vector.shape_cast %254 : vector<32xf32> to vector<32x1xf32>
    %256 = arith.addf %233, %255 : vector<32x1xf32>
    %c1_117 = arith.constant 1 : index
    %c0_118 = arith.constant 0 : index
    %c0_119 = arith.constant 0 : index
    %257 = vector.load %arg10[%c1_117, %c0_118, %c0_119] : memref<2x16x16xf32, #tpu.memory_space<vmem>>, vector<1x16x16xf32>
    %258 = vector.shape_cast %257 : vector<1x16x16xf32> to vector<16x16xf32>
    %c1_120 = arith.constant 1 : index
    %c0_121 = arith.constant 0 : index
    %c0_122 = arith.constant 0 : index
    %259 = vector.load %arg11[%c1_120, %c0_121, %c0_122] : memref<2x32x16xf32, #tpu.memory_space<vmem>>, vector<1x32x16xf32>
    %260 = vector.shape_cast %259 : vector<1x32x16xf32> to vector<32x16xf32>
    %cst_123 = arith.constant dense<0.000000e+00> : vector<32x16xf32>
    %261 = tpu.matmul %228, %258, %cst_123 {dimension_numbers = #tpu.dot_dimension_numbers<[1], [0], [0], [1], [0, 0, 1, 1], [], []>} : vector<32x16xf32>, vector<16x16xf32>, vector<32x16xf32> -> vector<32x16xf32>
    %cst_124 = arith.constant dense<0.000000e+00> : vector<32xf32>
    %262 = vector.multi_reduction <add>, %261, %cst_124 [1] : vector<32x16xf32> to vector<32xf32>
    %263 = vector.shape_cast %262 : vector<32xf32> to vector<32x1xf32>
    %264 = arith.addf %241, %263 : vector<32x1xf32>
    %265 = arith.mulf %261, %261 : vector<32x16xf32>
    %cst_125 = arith.constant dense<0.000000e+00> : vector<32xf32>
    %266 = vector.multi_reduction <add>, %265, %cst_125 [1] : vector<32x16xf32> to vector<32xf32>
    %267 = vector.shape_cast %266 : vector<32xf32> to vector<32x1xf32>
    %268 = arith.addf %245, %267 : vector<32x1xf32>
    %269 = arith.mulf %261, %260 : vector<32x16xf32>
    %cst_126 = arith.constant dense<0.000000e+00> : vector<32xf32>
    %270 = vector.multi_reduction <add>, %269, %cst_126 [1] : vector<32x16xf32> to vector<32xf32>
    %271 = vector.shape_cast %270 : vector<32xf32> to vector<32x1xf32>
    %272 = arith.addf %249, %271 : vector<32x1xf32>
    %cst_127 = arith.constant dense<0.000000e+00> : vector<32xf32>
    %273 = vector.multi_reduction <add>, %260, %cst_127 [1] : vector<32x16xf32> to vector<32xf32>
    %274 = vector.shape_cast %273 : vector<32xf32> to vector<32x1xf32>
    %275 = arith.addf %252, %274 : vector<32x1xf32>
    %276 = arith.mulf %260, %260 : vector<32x16xf32>
    %cst_128 = arith.constant dense<0.000000e+00> : vector<32xf32>
    %277 = vector.multi_reduction <add>, %276, %cst_128 [1] : vector<32x16xf32> to vector<32xf32>
    %278 = vector.shape_cast %277 : vector<32xf32> to vector<32x1xf32>
    %279 = arith.addf %256, %278 : vector<32x1xf32>
    %c0_129 = arith.constant 0 : index
    %c0_130 = arith.constant 0 : index
    %280 = vector.load %arg13[%c0_129, %c0_130] : memref<32x1xf32, #tpu.memory_space<vmem>>, vector<32x1xf32>
    %c0_131 = arith.constant 0 : index
    %c0_132 = arith.constant 0 : index
    %281 = vector.load %arg14[%c0_131, %c0_132] : memref<32x1xf32, #tpu.memory_space<vmem>>, vector<32x1xf32>
    %cst_133 = arith.constant 3.125000e-02 : f32
    %282 = vector.broadcast %cst_133 : f32 to vector<32x1xf32>
    %283 = arith.mulf %264, %282 : vector<32x1xf32>
    %cst_134 = arith.constant 3.125000e-02 : f32
    %284 = vector.broadcast %cst_134 : f32 to vector<32x1xf32>
    %285 = arith.mulf %268, %284 : vector<32x1xf32>
    %286 = arith.mulf %283, %283 : vector<32x1xf32>
    %287 = arith.subf %285, %286 : vector<32x1xf32>
    %cst_135 = arith.constant 0.000000e+00 : f32
    %288 = vector.broadcast %cst_135 : f32 to vector<32x1xf32>
    %289 = arith.maximumf %287, %288 : vector<32x1xf32>
    %cst_136 = arith.constant 9.99999974E-6 : f32
    %290 = vector.broadcast %cst_136 : f32 to vector<32x1xf32>
    %291 = arith.addf %289, %290 : vector<32x1xf32>
    %292 = math.rsqrt %291 : vector<32x1xf32>
    %293 = arith.mulf %280, %292 : vector<32x1xf32>
    %294 = arith.mulf %293, %293 : vector<32x1xf32>
    %295 = arith.mulf %294, %289 : vector<32x1xf32>
    %cst_137 = arith.constant 3.200000e+01 : f32
    %296 = vector.broadcast %cst_137 : f32 to vector<32x1xf32>
    %297 = arith.mulf %295, %296 : vector<32x1xf32>
    %cst_138 = arith.constant 2.000000e+00 : f32
    %298 = vector.broadcast %cst_138 : f32 to vector<32x1xf32>
    %299 = arith.mulf %298, %293 : vector<32x1xf32>
    %300 = arith.mulf %299, %281 : vector<32x1xf32>
    %cst_139 = arith.constant 3.200000e+01 : f32
    %301 = vector.broadcast %cst_139 : f32 to vector<32x1xf32>
    %302 = arith.mulf %301, %283 : vector<32x1xf32>
    %303 = arith.subf %264, %302 : vector<32x1xf32>
    %304 = arith.mulf %300, %303 : vector<32x1xf32>
    %305 = arith.addf %297, %304 : vector<32x1xf32>
    %cst_140 = arith.constant 3.200000e+01 : f32
    %306 = vector.broadcast %cst_140 : f32 to vector<32x1xf32>
    %307 = arith.mulf %306, %281 : vector<32x1xf32>
    %308 = arith.mulf %307, %281 : vector<32x1xf32>
    %309 = arith.addf %305, %308 : vector<32x1xf32>
    %310 = vector.shape_cast %309 : vector<32x1xf32> to vector<1x32x1xf32>
    %cst_141 = arith.constant dense<0.000000e+00> : vector<1xf32>
    %311 = vector.multi_reduction <add>, %310, %cst_141 [1, 2] : vector<1x32x1xf32> to vector<1xf32>
    %312 = vector.shape_cast %311 : vector<1xf32> to vector<1x1x1xf32>
    %313 = vector.extract %312[0, 0, 0] : f32 from vector<1x1x1xf32>
    %314 = vector.shape_cast %279 : vector<32x1xf32> to vector<1x32x1xf32>
    %cst_142 = arith.constant dense<0.000000e+00> : vector<1xf32>
    %315 = vector.multi_reduction <add>, %314, %cst_142 [1, 2] : vector<1x32x1xf32> to vector<1xf32>
    %316 = vector.shape_cast %315 : vector<1xf32> to vector<1x1x1xf32>
    %317 = vector.extract %316[0, 0, 0] : f32 from vector<1x1x1xf32>
    %318 = arith.mulf %283, %275 : vector<32x1xf32>
    %319 = arith.subf %272, %318 : vector<32x1xf32>
    %320 = arith.mulf %293, %319 : vector<32x1xf32>
    %321 = arith.mulf %281, %275 : vector<32x1xf32>
    %322 = arith.addf %320, %321 : vector<32x1xf32>
    %323 = vector.shape_cast %322 : vector<32x1xf32> to vector<1x32x1xf32>
    %cst_143 = arith.constant dense<0.000000e+00> : vector<1xf32>
    %324 = vector.multi_reduction <add>, %323, %cst_143 [1, 2] : vector<1x32x1xf32> to vector<1xf32>
    %325 = vector.shape_cast %324 : vector<1xf32> to vector<1x1x1xf32>
    %326 = vector.extract %325[0, 0, 0] : f32 from vector<1x1x1xf32>
    %cst_144 = arith.constant 9.99999996E-13 : f32
    %327 = arith.addf %313, %cst_144 : f32
    %328 = math.rsqrt %327 : f32
    %cst_145 = arith.constant 9.99999996E-13 : f32
    %329 = arith.addf %317, %cst_145 : f32
    %330 = math.rsqrt %329 : f32
    %331 = arith.mulf %313, %328 : f32
    %332 = arith.mulf %331, %328 : f32
    %333 = arith.mulf %317, %330 : f32
    %334 = arith.mulf %333, %330 : f32
    %335 = arith.addf %332, %334 : f32
    %cst_146 = arith.constant 2.000000e+00 : f32
    %336 = arith.mulf %cst_146, %326 : f32
    %337 = arith.mulf %336, %328 : f32
    %338 = arith.mulf %337, %330 : f32
    %339 = arith.subf %335, %338 : f32
    %cst_147 = arith.constant 2.000000e+00 : f32
    %340 = arith.divf %339, %cst_147 : f32
    %341 = arith.addf %227, %340 : f32
    %cst_148 = arith.constant 5.000000e-01 : f32
    %342 = arith.mulf %341, %cst_148 : f32
    %c0_149 = arith.constant 0 : index
    %343 = memref.load %arg15[%c0_149] : memref<1xf32, #tpu.memory_space<smem>>
    memref.store %342, %arg15[%c0_149] : memref<1xf32, #tpu.memory_space<smem>>
    return
  }
}

</mosaic_0001>

<bundles_post_ra>
// kernel: tpu_custom_call.1
= control target key start
LH: loop header
LB: loop body
LE: loop exit
PB: predicated region body
PF: predicated region fallthrough
CT: control target
= control target key end

     0   :  { %vm59_vm0 = vcmask 64512   ;;  %s2612_s0 = inlined_call_operand.vmem [shape: f32[2,8,256], index: 0, kind: input, shape index: {}]   ;;  %s2613_s1 = inlined_call_operand.vmem [shape: f32[2,16,256], index: 1, kind: input, shape index: {}]   ;;  %s2614_s2 = inlined_call_operand.vmem [shape: f32[16,8], index: 2, kind: input, shape index: {}]   ;;  %s2615_s3 = inlined_call_operand.vmem [shape: f32[16,1], index: 3, kind: input, shape index: {}]   ;;  %s2616_s4 = inlined_call_operand.vmem [shape: f32[16,1], index: 4, kind: input, shape index: {}]   ;;  %s2617_s5 = inlined_call_operand.vmem [shape: f32[2,16,64], index: 5, kind: input, shape index: {}]   ;;  %s2618_s6 = inlined_call_operand.vmem [shape: f32[2,32,64], index: 6, kind: input, shape index: {}]   ;;  %s2619_s7 = inlined_call_operand.vmem [shape: f32[32,16], index: 7, kind: input, shape index: {}]   ;;  %s2620_s8 = inlined_call_operand.vmem [shape: f32[32,1], index: 8, kind: input, shape index: {}]   ;;  %s2621_s9 = inlined_call_operand.vmem [shape: f32[32,1], index: 9, kind: input, shape index: {}]   ;;  %s2622_s10 = inlined_call_operand.vmem [shape: f32[2,16,16], index: 10, kind: input, shape index: {}]   ;;  %s2623_s11 = inlined_call_operand.vmem [shape: f32[2,32,16], index: 11, kind: input, shape index: {}]   ;;  %s2624_s12 = inlined_call_operand.vmem [shape: f32[32,16], index: 12, kind: input, shape index: {}]   ;;  %s2625_s13 = inlined_call_operand.vmem [shape: f32[32,1], index: 13, kind: input, shape index: {}]   ;;  %s2626_s14 = inlined_call_operand.vmem [shape: f32[32,1], index: 14, kind: input, shape index: {}]   ;;  %s2627_s15 = inlined_call_operand.hbm [shape: f32[1], index: 15, kind: output, shape index: {}]  }
   0x1   :  { %v53_v0 = vld [vmem:[%s2612_s0] sm:$0xff]  ;;  %v54_v1 = vld [vmem:[%s2612_s0 + $0x8] sm:$0xff]  ;;  %v1466_v3 = vld [vmem:[%s2612_s0 + $0x10] sm:$0xff] }
   0x2   :  { %v51_v2 = vld [vmem:[%s2614_s2] sm:$0xff]  ;;  %81 = vmatpush.msra.mxu0 %v53_v0  ;;  %104 = vmatpush.msra.mxu1 %v54_v1  ;;  %v1467_v4 = vld [vmem:[%s2612_s0 + $0x18] sm:$0xff]  ;;  %v1693_v6 = vld [vmem:[%s2613_s1 + $0x8] sm:$0xff] }
   0x3   :  { %v1686_v5 = vld [vmem:[%s2613_s1] sm:$0xff]  ;;  %1462 = vmatmul.msk.f32.vlgmr.msra.gmra.mxu0 %vm59_vm0, %v51_v2  ;;  %1464 = vmatmul.msk.f32.vlgmr.msra.gmra.mxu1 %vm59_vm0, %v51_v2  ;;  %v153_v9 = vmul.f32 %v1693_v6, %v1693_v6  ;;  %v1707_v10 = vld [vmem:[%s2613_s1 + $0x28] sm:$0xff]  ;;  %v1714_v12 = vld [vmem:[%s2613_s1 + $0x10] sm:$0xff] }
   0x4   :  { %v152_v7 = vmul.f32 %v1686_v5, %v1686_v5  ;;  %v1700_v8 = vld [vmem:[%s2613_s1 + $0x20] sm:$0xff]  ;;  %187 = vmatpush.msra.mxu2 %v1466_v3  ;;  %210 = vmatpush.msra.mxu3 %v1467_v4  ;;  %v1719_v13 = vld [vmem:[%s2613_s1 + $0x18] sm:$0xff]  ;;  %v259_v14 = vmul.f32 %v1707_v10, %v1707_v10  ;;  %v154_v15 = vmul.f32 %v1714_v12, %v1714_v12  ;;  %v1732_v17 = vld [vmem:[%s2613_s1 + $0x30] sm:$0xff] }
   0x5   :  { %v258_v11 = vmul.f32 %v1700_v8, %v1700_v8  ;;  %1472 = vmatmul.msk.f32.vlgmr.msra.gmra.mxu2 %vm59_vm0, %v51_v2  ;;  %1474 = vmatmul.msk.f32.vlgmr.msra.gmra.mxu3 %vm59_vm0, %v51_v2  ;;  %v155_v16 = vmul.f32 %v1719_v13, %v1719_v13  ;;  %v1737_v18 = vld [vmem:[%s2613_s1 + $0x38] sm:$0xff]  ;;  %v429_v19 = vld [vmem:[%s2617_s5 + $0x8] sm:$0xff]  ;;  %v428_v22 = vld [vmem:[%s2617_s5] sm:$0xff]  ;;  %v260_v28 = vmul.f32 %v1732_v17, %v1732_v17 }
   0x6   :  { %v156_v20 = vadd.f32 %v153_v9, %v152_v7  ;;  %461 = vmatpush.msrb.mxu0 %v429_v19  ;;  %v940_v21 = vld [vmem:[%s2622_s10 + $0x8] sm:$0xff]  ;;  %v1481_v25 = vld [vmem:[%s2617_s5 + $0x18] sm:$0xff]  ;;  %v939_v26 = vld [vmem:[%s2622_s10] sm:$0xff]  ;;  %v261_v29 = vmul.f32 %v1737_v18, %v1737_v18 }
   0x7   :  { %v262_v23 = vadd.f32 %v259_v14, %v258_v11  ;;  %v159_v24 = vadd.f32 %v155_v16, %v154_v15  ;;  %971 = vmatpush.msrb.mxu2 %v940_v21  ;;  %v52_v27 = vld [vmem:[%s2614_s2 + $0x8] sm:$0xff]  ;;  %v1480_v30 = vld [vmem:[%s2617_s5 + $0x10] sm:$0xff] }
   0x8   :  { %157 = vadd.xlane.f32.xlu2 %v156_v20  ;;  %462 = vmatpush.msrb.mxu0 %v428_v22 }
   0x9   :  { %263 = vadd.xlane.f32.xlu1 %v262_v23  ;;  %160 = vadd.xlane.f32.xlu0 %v159_v24 }
   0xa   :  { %20 = vsyncpa [#allocation3], 0  ;;  %591 = vmatpush.msrb.mxu1 %v1481_v25  ;;  %972 = vmatpush.msrb.mxu2 %v939_v26  ;;  %v1495_v31 = vld [vmem:[%s2622_s10 + $0x18] sm:$0xff]  ;;  %v1494_v32 = vld [vmem:[%s2622_s10 + $0x10] sm:$0xff]  ;;  %v265_v33 = vadd.f32 %v261_v29, %v260_v28  ;;  %v144_v34 = vadd.f32 %v1693_v6, %v1686_v5  ;;  %vm434_vm1 = vcmask 130048   ;;  %v253_v41 = vadd.f32 %v1737_v18, %v1732_v17 }
   0xb   :  { %1463 = vmatmul.msk.f32.gmra.mxu0 %vm59_vm0, %v52_v27  ;;  %1465 = vmatmul.msk.f32.gmra.mxu1 %vm59_vm0, %v52_v27  ;;  %v424_v35 = vld [vmem:[%s2619_s7] sm:$0xff]  ;;  %v425_v37 = vld [vmem:[%s2619_s7 + $0x8] sm:$0xff]  ;;  %v426_v39 = vld [vmem:[%s2619_s7 + $0x10] sm:$0xff]  ;;  %v147_v43 = vadd.f32 %v1719_v13, %v1714_v12  ;;  %v250_v44 = vadd.f32 %v1707_v10, %v1700_v8  ;;  %vm332_vm2 = vcmask 7168   ;;  %vm476_vm3 = vcmask 523264  }
   0xc   :  { %592 = vmatpush.msrb.mxu1 %v1480_v30  ;;  %1100 = vmatpush.msrb.mxu3 %v1495_v31  ;;  %v935_v36 = vld [vmem:[%s2624_s12] sm:$0xff]  ;;  %v936_v38 = vld [vmem:[%s2624_s12 + $0x8] sm:$0xff]  ;;  %v427_v40 = vld [vmem:[%s2619_s7 + $0x18] sm:$0xff] }
   0xd   :  { %1473 = vmatmul.msk.f32.gmra.mxu2 %vm59_vm0, %v52_v27  ;;  %1475 = vmatmul.msk.f32.gmra.mxu3 %vm59_vm0, %v52_v27  ;;  %v937_v42 = vld [vmem:[%s2624_s12 + $0x10] sm:$0xff]  ;;  %v938_v45 = vld [vmem:[%s2624_s12 + $0x18] sm:$0xff]  ;;  %v1839_v25 = vld [vmem:[%s2618_s6] sm:$0xff] }
   0xe   :  { %1101 = vmatpush.msrb.mxu3 %v1494_v32  ;;  %v1844_v28 = vld [vmem:[%s2618_s6 + $0x8] sm:$0xff] }
   0xf   :  { %v1854_v32 = vld [vmem:[%s2618_s6 + $0x28] sm:$0xff] }
  0x10   :  { %266 = vadd.xlane.f32.xlu2 %v265_v33 }
  0x11   :  { %145 = vadd.xlane.f32.xlu0 %v144_v34  ;;  %148 = vadd.xlane.f32.xlu1 %v147_v43  ;;  %v1860_v34 = vld [vmem:[%s2618_s6 + $0x10] sm:$0xff] }
  0x13   :  { %1476 = vmatmul.msk.f32.vlgmr.msrb.gmra.mxu0 %vm434_vm1, %v424_v35  ;;  %1486 = vmatmul.msk.f32.vlgmr.msrb.gmra.mxu1 %vm434_vm1, %v424_v35  ;;  %v679_v35 = vmul.f32 %v1854_v32, %v1854_v32 }
  0x15   :  { %1490 = vmatmul.msk.f32.vlgmr.msrb.gmra.mxu2 %vm434_vm1, %v935_v36  ;;  %1500 = vmatmul.msk.f32.vlgmr.msrb.gmra.mxu3 %vm434_vm1, %v935_v36 }
  0x18   :  { %251 = vadd.xlane.f32.xlu2 %v250_v44 }
  0x19   :  { %254 = vadd.xlane.f32.xlu0 %v253_v41 }
  0x1b   :  { %1487 = vmatmul.msk.f32.gmra.mxu1 %vm434_vm1, %v425_v37  ;;  %1477 = vmatmul.msk.f32.gmra.mxu0 %vm434_vm1, %v425_v37  ;;  %v1867_v37 = vld [vmem:[%s2618_s6 + $0x30] sm:$0xff] }
  0x1d   :  { %1491 = vmatmul.msk.f32.gmra.mxu2 %vm434_vm1, %v936_v38  ;;  %1501 = vmatmul.msk.f32.gmra.mxu3 %vm434_vm1, %v936_v38  ;;  %v551_v38 = vmul.f32 %v1860_v34, %v1860_v34 }
  0x1f   :  { %v559_v41 = vsel %vm476_vm3, %v551_v38, 0.0 }
  0x23   :  { %1478 = vmatmul.msk.f32.gmra.mxu0 %vm434_vm1, %v426_v39  ;;  %1488 = vmatmul.msk.f32.gmra.mxu1 %vm434_vm1, %v426_v39  ;;  %v685_v39 = vsel %vm476_vm3, %v679_v35, 0.0 }
  0x25   :  { %1492 = vmatmul.msk.f32.gmra.mxu2 %vm434_vm1, %v937_v42  ;;  %1502 = vmatmul.msk.f32.gmra.mxu3 %vm434_vm1, %v937_v42 }
  0x2b   :  { %1489 = vmatmul.msk.f32.gmra.mxu1 %vm434_vm1, %v427_v40  ;;  %1479 = vmatmul.msk.f32.gmra.mxu0 %vm434_vm1, %v427_v40  ;;  %v680_v40 = vmul.f32 %v1867_v37, %v1867_v37 }
  0x2d   :  { %1493 = vmatmul.msk.f32.gmra.mxu2 %vm434_vm1, %v938_v45  ;;  %1503 = vmatmul.msk.f32.gmra.mxu3 %vm434_vm1, %v938_v45  ;;  %v688_v42 = vsel %vm476_vm3, %v680_v40, 0.0 }
  0x7b   :  { %v158_v46 = vpop.xlane.xlu2 %157 }
  0x7c   :  { %v264_v47 = vpop.xlane.xlu1 %263  ;;  %v161_v51 = vpop.xlane.xlu0 %160 }
  0x7d   :  { %v268_v50 = vadd.f32 %v264_v47, %v158_v46 }
  0x7f   :  { %v345_v58 = vsel %vm332_vm2, %v268_v50, 0.0  ;;  %v1887_v50 = vld [vmem:[%s2618_s6 + $0x38] sm:$0xff] }
  0x80   :  { %v83_v48 = vpop.f32.mrf.mxu0  ;;  %v106_v49 = vpop.f32.mrf.mxu1 }
  0x81   :  { %v112_v52 = vadd.f32 %v106_v49, %v83_v48  ;;  %v132_v53 = vmul.f32 %v83_v48, %v1686_v5  ;;  %v133_v54 = vmul.f32 %v106_v49, %v1693_v6  ;;  %v120_v3 = vmul.f32 %v83_v48, %v83_v48  ;;  %v1829_v5 = vld [vmem:[%s2618_s6 + $0x20] sm:$0xff] }
  0x82   :  { %v121_v4 = vmul.f32 %v106_v49, %v106_v49  ;;  %v678_v9 = vmul.f32 %v1829_v5, %v1829_v5 }
  0x83   :  { %v267_v55 = vpop.xlane.xlu2 %266  ;;  %113 = vadd.xlane.f32.xlu0 %v112_v52  ;;  %v136_v56 = vadd.f32 %v133_v54, %v132_v53  ;;  %v1900_v52 = vld [vmem:[%s2618_s6 + $0x18] sm:$0xff] }
  0x84   :  { %v269_v57 = vadd.f32 %v267_v55, %v161_v51  ;;  %v124_v11 = vadd.f32 %v121_v4, %v120_v3  ;;  %v682_v19 = vsel %vm476_vm3, %v678_v9, 0.0  ;;  %v681_v51 = vmul.f32 %v1887_v50, %v1887_v50 }
  0x85   :  { %137 = vadd.xlane.f32.xlu1 %v136_v56  ;;  %v552_v55 = vmul.f32 %v1900_v52, %v1900_v52 }
  0x86   :  { %v346_v59 = vsel %vm332_vm2, %v269_v57, 0.0  ;;  %v691_v53 = vsel %vm476_vm3, %v681_v51, 0.0 }
  0x87   :  { %v347_v60 = vadd.f32 %v346_v59, %v345_v58  ;;  %v562_v58 = vsel %vm476_vm3, %v552_v55, 0.0 }
  0x88   :  { %v86_v61 = vpop.f32.mrf.mxu0  ;;  %v109_v62 = vpop.f32.mrf.mxu1 }
  0x89   :  { %348 = vadd.xlane.f32.xlu2 %v347_v60  ;;  %v189_v63 = vpop.f32.mrf.mxu2  ;;  %v212_v0 = vpop.f32.mrf.mxu3  ;;  %v115_v1 = vadd.f32 %v109_v62, %v86_v61  ;;  %v122_v15 = vmul.f32 %v86_v61, %v86_v61  ;;  %v123_v16 = vmul.f32 %v109_v62, %v109_v62  ;;  %v134_v43 = vmul.f32 %v86_v61, %v1714_v12 }
  0x8a   :  { %v218_v2 = vadd.f32 %v212_v0, %v189_v63  ;;  %v226_v6 = vmul.f32 %v189_v63, %v189_v63  ;;  %v227_v7 = vmul.f32 %v212_v0, %v212_v0  ;;  %v238_v21 = vmul.f32 %v1700_v8, %v189_v63 }
  0x8b   :  { %116 = vadd.xlane.f32.xlu0 %v115_v1  ;;  %v127_v20 = vadd.f32 %v123_v16, %v122_v15  ;;  %v239_v22 = vmul.f32 %v1707_v10, %v212_v0  ;;  %v549_v8 = vmul.f32 %v1839_v25, %v1839_v25  ;;  %v550_v10 = vmul.f32 %v1844_v28, %v1844_v28  ;;  %v1973_v40 = vpop.xlane.xlu2 %251 }
  0x8c   :  { %v230_v14 = vadd.f32 %v227_v7, %v226_v6  ;;  %v135_v44 = vmul.f32 %v109_v62, %v1719_v13 }
  0x8d   :  { %219 = vadd.xlane.f32.xlu1 %v218_v2  ;;  %v242_v26 = vadd.f32 %v239_v22, %v238_v21  ;;  %v553_v29 = vsel %vm476_vm3, %v549_v8, 0.0  ;;  %v556_v33 = vsel %vm476_vm3, %v550_v10, 0.0  ;;  %v1956_v10 = vpop.xlane.xlu0 %145 }
  0x8e   :  { %v139_v46 = vadd.f32 %v135_v44, %v134_v43 }
  0x90   :  { %v1878_v45 = vpop.f32.mrf.mxu0  ;;  %v1889_v12 = vpop.f32.mrf.mxu1 }
  0x91   :  { %125 = vadd.xlane.f32.xlu2 %v124_v11  ;;  %v192_v23 = vpop.f32.mrf.mxu2  ;;  %v215_v24 = vpop.f32.mrf.mxu3  ;;  %v477_v49 = vsel %vm476_vm3, %v1878_v45, 0.0  ;;  %v493_v61 = vmul.f32 %v1878_v45, %v1878_v45  ;;  %v622_v4 = vmul.f32 %v1889_v12, %v1889_v12 }
  0x92   :  { %v221_v27 = vadd.f32 %v215_v24, %v192_v23  ;;  %v228_v30 = vmul.f32 %v192_v23, %v192_v23  ;;  %v229_v31 = vmul.f32 %v215_v24, %v215_v24  ;;  %v240_v47 = vmul.f32 %v1732_v17, %v192_v23 }
  0x93   :  { %231 = vadd.xlane.f32.xlu0 %v230_v14  ;;  %v241_v48 = vmul.f32 %v1737_v18, %v215_v24  ;;  %v606_v17 = vsel %vm476_vm3, %v1889_v12, 0.0  ;;  %v497_v0 = vsel %vm476_vm3, %v493_v61, 0.0  ;;  %v626_v7 = vsel %vm476_vm3, %v622_v4, 0.0 }
  0x94   :  { %v233_v36 = vadd.f32 %v229_v31, %v228_v30 }
  0x95   :  { %683 = vadd.xlane.f32.xlu1 %v682_v19  ;;  %v245_v13 = vadd.f32 %v241_v48, %v240_v47 }
  0x98   :  { %v1907_v56 = vpop.f32.mrf.mxu1  ;;  %v1909_v57 = vpop.f32.mrf.mxu0 }
  0x99   :  { %128 = vadd.xlane.f32.xlu2 %v127_v20  ;;  %v1895_v18 = vpop.f32.mrf.mxu2  ;;  %v609_v59 = vsel %vm476_vm3, %v1907_v56, 0.0  ;;  %v480_v60 = vsel %vm476_vm3, %v1909_v57, 0.0  ;;  %v494_v62 = vmul.f32 %v1909_v57, %v1909_v57  ;;  %v623_v6 = vmul.f32 %v1907_v56, %v1907_v56 }
  0x9a   :  { %v986_v54 = vsel %vm434_vm1, %v1895_v18, 0.0  ;;  %v1002_v38 = vmul.f32 %v1895_v18, %v1895_v18 }
  0x9b   :  { %243 = vadd.xlane.f32.xlu0 %v242_v26  ;;  %v500_v1 = vsel %vm476_vm3, %v494_v62, 0.0  ;;  %v629_v9 = vsel %vm476_vm3, %v623_v6, 0.0 }
  0x9d   :  { %222 = vadd.xlane.f32.xlu1 %v221_v27 }
  0xa0   :  { %v1920_v63 = vpop.f32.mrf.mxu0  ;;  %v1926_v3 = vpop.f32.mrf.mxu1 }
  0xa1   :  { %554 = vadd.xlane.f32.xlu2 %v553_v29  ;;  %v483_v2 = vsel %vm476_vm3, %v1920_v63, 0.0  ;;  %v612_v11 = vsel %vm476_vm3, %v1926_v3, 0.0  ;;  %v495_v14 = vmul.f32 %v1920_v63, %v1920_v63  ;;  %v624_v16 = vmul.f32 %v1926_v3, %v1926_v3  ;;  %v1958_v29 = vpop.f32.mrf.mxu3  ;;  %v1962_v31 = vpop.f32.mrf.mxu2 }
  0xa2   :  { %v1115_v30 = vsel %vm434_vm1, %v1958_v29, 0.0  ;;  %v989_v35 = vsel %vm434_vm1, %v1962_v31, 0.0 }
  0xa3   :  { %557 = vadd.xlane.f32.xlu0 %v556_v33  ;;  %v503_v20 = vsel %vm476_vm3, %v495_v14, 0.0  ;;  %v632_v22 = vsel %vm476_vm3, %v624_v16, 0.0  ;;  %v1964_v33 = vpop.xlane.xlu0 %254 }
  0xa5   :  { %234 = vadd.xlane.f32.xlu1 %v233_v36  ;;  %v1968_v36 = vpop.xlane.xlu1 %148 }
  0xa8   :  { %v1938_v15 = vpop.f32.mrf.mxu1  ;;  %v1942_v19 = vpop.f32.mrf.mxu0 }
  0xa9   :  { %686 = vadd.xlane.f32.xlu2 %v685_v39  ;;  %v615_v21 = vsel %vm476_vm3, %v1938_v15, 0.0  ;;  %v496_v23 = vmul.f32 %v1942_v19, %v1942_v19  ;;  %v625_v24 = vmul.f32 %v1938_v15, %v1938_v15  ;;  %v486_v8 = vsel %vm476_vm3, %v1942_v19, 0.0  ;;  %v1979_v43 = vpop.f32.mrf.mxu3 }
  0xaa   :  { %v1006_v39 = vsel %vm434_vm1, %v1002_v38, 0.0  ;;  %2641 = vst [vmem:[#allocation5_spill] sm:$0xff] %v1979_v43  ;;  %v513_v38 = vmul.f32 %v1878_v45, %v1839_v25 }
  0xab   :  { %560 = vadd.xlane.f32.xlu0 %v559_v41  ;;  %v506_v26 = vsel %vm476_vm3, %v496_v23, 0.0  ;;  %v635_v27 = vsel %vm476_vm3, %v625_v24, 0.0  ;;  %v1131_v41 = vmul.f32 %v1958_v29, %v1958_v29 }
  0xad   :  { %689 = vadd.xlane.f32.xlu1 %v688_v42  ;;  %v1977_v42 = vpop.f32.mrf.mxu2  ;;  %v1135_v48 = vsel %vm434_vm1, %v1131_v41, 0.0 }
  0xae   :  { %v992_v44 = vsel %vm434_vm1, %v1977_v42, 0.0 }
  0xb1   :  { %140 = vadd.xlane.f32.xlu2 %v139_v46  ;;  %v1990_v51 = vpop.f32.mrf.mxu3 }
  0xb2   :  { %2642 = vst [vmem:[#allocation6_spill] sm:$0xff] %v1990_v51  ;;  %v1133_v14 = vmul.f32 %v1990_v51, %v1990_v51 }
  0xb3   :  { %478 = vadd.xlane.f32.xlu0 %v477_v49 }
  0xb5   :  { %246 = vadd.xlane.f32.xlu1 %v245_v13  ;;  %v1004_v13 = vmul.f32 %v1977_v42, %v1977_v42 }
  0xb7   :  { %v1012_v55 = vsel %vm434_vm1, %v1004_v13, 0.0  ;;  %v1118_v13 = vsel %vm434_vm1, %v1979_v43, 0.0 }
  0xb9   :  { %607 = vadd.xlane.f32.xlu2 %v606_v17  ;;  %v1121_v17 = vsel %vm434_vm1, %v1990_v51, 0.0 }
  0xbb   :  { %692 = vadd.xlane.f32.xlu0 %v691_v53 }
  0xbd   :  { %987 = vadd.xlane.f32.xlu1 %v986_v54 }
  0xc1   :  { %563 = vadd.xlane.f32.xlu2 %v562_v58 }
  0xc3   :  { %610 = vadd.xlane.f32.xlu0 %v609_v59  ;;  %v1997_v59 = vpop.f32.mrf.mxu2 }
  0xc4   :  { %2643 = vst [vmem:[#allocation7_spill] sm:$0xff] %v1997_v59  ;;  %v1005_v61 = vmul.f32 %v1997_v59, %v1997_v59 }
  0xc5   :  { %481 = vadd.xlane.f32.xlu1 %v480_v60 }
  0xc6   :  { %v1015_v6 = vsel %vm434_vm1, %v1005_v61, 0.0 }
  0xc9   :  { %498 = vadd.xlane.f32.xlu2 %v497_v0  ;;  %v995_v0 = vsel %vm434_vm1, %v1997_v59, 0.0 }
  0xcb   :  { %501 = vadd.xlane.f32.xlu0 %v500_v1 }
  0xcd   :  { %484 = vadd.xlane.f32.xlu1 %v483_v2 }
  0xd1   :  { %627 = vadd.xlane.f32.xlu2 %v626_v7 }
  0xd3   :  { %630 = vadd.xlane.f32.xlu0 %v629_v9 }
  0xd5   :  { %613 = vadd.xlane.f32.xlu1 %v612_v11 }
  0xd9   :  { %504 = vadd.xlane.f32.xlu2 %v503_v20 }
  0xdb   :  { %616 = vadd.xlane.f32.xlu0 %v615_v21  ;;  %v1141_v21 = vsel %vm434_vm1, %v1133_v14, 0.0 }
  0xdd   :  { %633 = vadd.xlane.f32.xlu1 %v632_v22 }
  0xe1   :  { %507 = vadd.xlane.f32.xlu2 %v506_v26  ;;  %v536_v26 = vsel %vm476_vm3, %v1844_v28, 0.0 }
  0xe3   :  { %636 = vadd.xlane.f32.xlu0 %v635_v27 }
  0xe5   :  { %487 = vadd.xlane.f32.xlu1 %v486_v8 }
  0xe9   :  { %990 = vadd.xlane.f32.xlu2 %v989_v35 }
  0xeb   :  { %1116 = vadd.xlane.f32.xlu0 %v1115_v30 }
  0xed   :  { %1119 = vadd.xlane.f32.xlu1 %v1118_v13 }
  0xf1   :  { %993 = vadd.xlane.f32.xlu2 %v992_v44 }
  0xf3   :  { %1007 = vadd.xlane.f32.xlu0 %v1006_v39 }
  0xf6   :  { %v114_v46 = vpop.xlane.xlu0 %113 }
  0xf8   :  { %v1983_v47 = vpop.xlane.xlu1 %137 }
  0xf9   :  { %1122 = vadd.xlane.f32.xlu2 %v1121_v17 }
  0xfb   :  { %1136 = vadd.xlane.f32.xlu0 %v1135_v48 }
  0xfc   :  { %v1986_v49 = vpop.xlane.xlu2 %348 }
  0xfe   :  { %v117_v53 = vpop.xlane.xlu0 %116 }
 0x100   :  { %v220_v54 = vpop.xlane.xlu1 %219 }
 0x101   :  { %v1995_v58 = vadd.f32 %v220_v54, %v114_v46  ;;  %996 = vadd.xlane.f32.xlu2 %v995_v0 }
 0x103   :  { %1013 = vadd.xlane.f32.xlu0 %v1012_v55  ;;  %v2002_v62 = vmul.f32 0.001953125, %v1995_v58 }
 0x104   :  { %v126_v60 = vpop.xlane.xlu2 %125 }
 0x105   :  { %v278_v7 = vmul.f32 %v2002_v62, %v2002_v62 }
 0x106   :  { %v232_v1 = vpop.xlane.xlu0 %231 }
 0x107   :  { %v236_v2 = vadd.f32 %v232_v1, %v126_v60 }
 0x108   :  { %v684_v4 = vpop.xlane.xlu1 %683 }
 0x109   :  { %v276_v9 = vmul.f32 0.001953125, %v236_v2  ;;  %1142 = vadd.xlane.f32.xlu2 %v1141_v21 }
 0x10b   :  { %v280_v11 = vsub.f32 %v276_v9, %v278_v7  ;;  %1016 = vadd.xlane.f32.xlu0 %v1015_v6 }
 0x10c   :  { %v129_v16 = vpop.xlane.xlu2 %128 }
 0x10d   :  { %v2011_v20 = vmax.f32 %v280_v11, 0.0 }
 0x10e   :  { %v244_v22 = vpop.xlane.xlu0 %243 }
 0x10f   :  { %v284_v23 = vadd.f32 1e-05, %v2011_v20 }
 0x110   :  { %v223_v24 = vpop.xlane.xlu1 %222 }
 0x111   :  { %1538 = vrsqrt.f32 %v284_v23  ;;  %v2017_v27 = vadd.f32 %v223_v24, %v117_v53  ;;  %v517_v53 = vsel %vm476_vm3, %v513_v38, 0.0  ;;  %vm292_vm5 = vweird.f32 %v284_v23 }
 0x113   :  { %537 = vadd.xlane.f32.xlu0 %v536_v26  ;;  %v2022_v41 = vmul.f32 0.001953125, %v2017_v27 }
 0x114   :  { %v555_v8 = vpop.xlane.xlu2 %554 }
 0x115   :  { %v694_v30 = vadd.f32 %v684_v4, %v555_v8  ;;  %v279_v55 = vmul.f32 %v2022_v41, %v2022_v41  ;;  %v642_v4 = vmul.f32 %v1829_v5, %v1889_v12 }
 0x116   :  { %v558_v35 = vpop.xlane.xlu0 %557 }
 0x117   :  { %v1539_v39 = vpop.eup %1538  ;;  %v838_v6 = vsel %vm332_vm2, %v694_v30, 0.0  ;;  %v646_v26 = vsel %vm476_vm3, %v642_v4, 0.0  ;;  %v257_v4 = vadd.f32 %v1964_v33, %v1968_v36  ;;  %v273_v33 = vld [vmem:[%s2616_s4 + $0x8] sm:$0xff] }
 0x118   :  { %v287_v44 = vmul.f32 %v1539_v39, %v284_v23  ;;  %v235_v46 = vpop.xlane.xlu1 %234  ;;  %vm293_vm4 = vweird.f32 %v1539_v39 }
 0x119   :  { %v237_v48 = vadd.f32 %v235_v46, %v129_v16  ;;  %vm294_vm6 = vmor %vm292_vm5, %vm293_vm4  ;;  %v515_v46 = vmul.f32 %v1920_v63, %v1860_v34  ;;  %v318_v63 = vmul.f32 512.0, %v2002_v62 }
 0x11a   :  { %v288_v17 = vmul.f32 %v1539_v39, %v287_v44 }
 0x11b   :  { %v277_v54 = vmul.f32 0.001953125, %v237_v48  ;;  %518 = vadd.xlane.f32.xlu0 %v517_v53  ;;  %v523_v23 = vsel %vm476_vm3, %v515_v46, 0.0  ;;  %v320_v36 = vsub.f32 %v1995_v58, %v318_v63 }
 0x11c   :  { %v289_v45 = vmul.f32 0.5, %v288_v17  ;;  %v687_v60 = vpop.xlane.xlu2 %686 }
 0x11d   :  { %v281_v61 = vsub.f32 %v277_v54, %v279_v55  ;;  %v695_v0 = vadd.f32 %v687_v60, %v558_v35  ;;  %v270_v35 = vld [vmem:[%s2615_s3] sm:$0xff] }
 0x11e   :  { %v290_v1 = vsub.f32 1.5, %v289_v45  ;;  %v561_v2 = vpop.xlane.xlu0 %560  ;;  %v256_v45 = vadd.f32 %v1973_v40, %v1956_v10 }
 0x11f   :  { %v2032_v7 = vmax.f32 %v281_v61, 0.0  ;;  %v839_v9 = vsel %vm332_vm2, %v695_v0, 0.0 }
 0x120   :  { %v840_v11 = vadd.f32 %v839_v9, %v838_v6  ;;  %v690_v14 = vpop.xlane.xlu1 %689  ;;  %v291_v24 = vmul.f32 %v1539_v39, %v290_v1  ;;  %v272_v6 = vld [vmem:[%s2616_s4] sm:$0xff] }
 0x121   :  { %v285_v16 = vadd.f32 1e-05, %v2032_v7  ;;  %v696_v21 = vadd.f32 %v690_v14, %v561_v2  ;;  %v357_v2 = vmul.f32 %v2002_v62, %v256_v45  ;;  %v271_v62 = vld [vmem:[%s2615_s3 + $0x8] sm:$0xff] }
 0x122   :  { %v295_v38 = vsel %vm294_vm6, %v1539_v39, %v291_v24  ;;  %v248_v39 = vadd.f32 %v244_v22, %v1983_v47  ;;  %v358_v24 = vmul.f32 %v2022_v41, %v257_v4 }
 0x123   :  { %1540 = vrsqrt.f32 %v285_v16  ;;  %v841_v8 = vsel %vm332_vm2, %v696_v21, 0.0  ;;  %647 = vadd.xlane.f32.xlu0 %v646_v26  ;;  %v306_v17 = vmul.f32 %v295_v38, %v270_v35  ;;  %vm302_vm8 = vweird.f32 %v285_v16 }
 0x124   :  { %v141_v12 = vpop.xlane.xlu2 %140  ;;  %v2038_v30 = vadd.f32 %v841_v8, %v840_v11  ;;  %v359_v47 = vsub.f32 %v248_v39, %v357_v2  ;;  %v319_v26 = vmul.f32 512.0, %v2022_v41  ;;  %v326_v35 = vmul.f32 512.0, %v272_v6 }
 0x125   :  { %v308_v60 = vmul.f32 %v306_v17, %v306_v17  ;;  %v314_v61 = vmul.f32 2.0, %v306_v17 }
 0x126   :  { %v2043_v44 = vpop.xlane.xlu0 %478  ;;  %v361_v21 = vmul.f32 %v359_v47, %v306_v17 }
 0x127   :  { %v310_v40 = vmul.f32 %v308_v60, %v2011_v20  ;;  %v316_v11 = vmul.f32 %v314_v61, %v272_v6  ;;  %v363_v20 = vmul.f32 %v272_v6, %v256_v45  ;;  %v321_v61 = vsub.f32 %v2017_v27, %v319_v26 }
 0x128   :  { %v247_v48 = vpop.xlane.xlu1 %246 }
 0x129   :  { %v1541_v13 = vpop.eup %1540  ;;  %v249_v22 = vadd.f32 %v247_v48, %v141_v12  ;;  %v312_v38 = vmul.f32 512.0, %v310_v40  ;;  %v322_v48 = vmul.f32 %v320_v36, %v316_v11  ;;  %v365_v17 = vadd.f32 %v363_v20, %v361_v21 }
 0x12a   :  { %v297_v53 = vmul.f32 %v1541_v13, %v285_v16  ;;  %vm303_vm7 = vweird.f32 %v1541_v13 }
 0x12b   :  { %524 = vadd.xlane.f32.xlu0 %v523_v23  ;;  %vm304_vm9 = vmor %vm302_vm8, %vm303_vm7  ;;  %v360_v16 = vsub.f32 %v249_v22, %v358_v24  ;;  %v324_v2 = vadd.f32 %v322_v48, %v312_v38  ;;  %v367_v47 = vsel %vm332_vm2, %v365_v17, 0.0 }
 0x12c   :  { %v298_v54 = vmul.f32 %v1541_v13, %v297_v53  ;;  %v608_v55 = vpop.xlane.xlu2 %607  ;;  %v364_v53 = vmul.f32 %v273_v33, %v257_v4 }
 0x12e   :  { %v299_v0 = vmul.f32 0.5, %v298_v54  ;;  %v2051_v1 = vpop.xlane.xlu0 %692  ;;  %v327_v54 = vmul.f32 512.0, %v273_v33 }
 0x130   :  { %v300_v9 = vsub.f32 1.5, %v299_v0  ;;  %v2060_v10 = vpop.xlane.xlu1 %987  ;;  %v328_v0 = vmul.f32 %v326_v35, %v272_v6 }
 0x132   :  { %v301_v14 = vmul.f32 %v1541_v13, %v300_v9  ;;  %v329_v9 = vmul.f32 %v327_v54, %v273_v33  ;;  %v330_v36 = vadd.f32 %v328_v0, %v324_v2  ;;  %v665_v0 = vsel %vm476_vm3, %v1854_v32, 0.0 }
 0x134   :  { %v305_v8 = vsel %vm304_vm9, %v1541_v13, %v301_v14  ;;  %v2072_v12 = vpop.xlane.xlu2 %563  ;;  %v333_v24 = vsel %vm332_vm2, %v330_v36, 0.0  ;;  %v539_v36 = vsel %vm476_vm3, %v1860_v34, 0.0 }
 0x135   :  { %v307_v46 = vmul.f32 %v305_v8, %v271_v62  ;;  %v533_v8 = vsel %vm476_vm3, %v1839_v25, 0.0 }
 0x136   :  { %v611_v23 = vpop.xlane.xlu0 %610 }
 0x137   :  { %v309_v60 = vmul.f32 %v307_v46, %v307_v46  ;;  %v362_v58 = vmul.f32 %v360_v16, %v307_v46  ;;  %v315_v39 = vmul.f32 2.0, %v307_v46 }
 0x138   :  { %v482_v45 = vpop.xlane.xlu1 %481 }
 0x139   :  { %v311_v41 = vmul.f32 %v309_v60, %v2032_v7  ;;  %v366_v13 = vadd.f32 %v364_v53, %v362_v58  ;;  %v317_v63 = vmul.f32 %v315_v39, %v273_v33  ;;  %v2079_v7 = vadd.f32 %v608_v55, %v2043_v44 }
 0x13a   :  { %v2083_v26 = vadd.f32 %v611_v23, %v482_v45  ;;  %v1003_v44 = vmul.f32 %v1962_v31, %v1962_v31 }
 0x13b   :  { %v313_v40 = vmul.f32 512.0, %v311_v41  ;;  %v368_v4 = vsel %vm332_vm2, %v366_v13, 0.0  ;;  %v323_v22 = vmul.f32 %v321_v61, %v317_v63  ;;  %v2088_v38 = vmul.f32 0.0078125, %v2079_v7 }
 0x13c   :  { %v499_v11 = vpop.xlane.xlu2 %498  ;;  %v369_v62 = vadd.f32 %v368_v4, %v367_v47  ;;  %v2093_v55 = vmul.f32 0.0078125, %v2083_v26  ;;  %v1009_v17 = vsel %vm434_vm1, %v1003_v44, 0.0  ;;  %v1132_v47 = vmul.f32 %v1979_v43, %v1979_v43 }
 0x13d   :  { %v325_v14 = vadd.f32 %v323_v22, %v313_v40  ;;  %v714_v53 = vmul.f32 %v2088_v38, %v2088_v38 }
 0x13e   :  { %370 = vadd.xlane.f32.xlu2 %v369_v62  ;;  %v502_v27 = vpop.xlane.xlu0 %501  ;;  %v715_v60 = vmul.f32 %v2093_v55, %v2093_v55 }
 0x13f   :  { %v331_v21 = vadd.f32 %v329_v9, %v325_v14  ;;  %v1138_v14 = vsel %vm434_vm1, %v1132_v47, 0.0 }
 0x140   :  { %v485_v6 = vpop.xlane.xlu1 %484 }
 0x141   :  { %v334_v33 = vsel %vm332_vm2, %v331_v21, 0.0 }
 0x142   :  { %v335_v20 = vadd.f32 %v334_v33, %v333_v24 }
 0x144   :  { %v628_v35 = vpop.xlane.xlu2 %627  ;;  %336 = vadd.xlane.f32.xlu1 %v335_v20  ;;  %v2120_v20 = vpop.f32.mrf.mxu3 }
 0x145   :  { %v638_v46 = vadd.f32 %v628_v35, %v499_v11  ;;  %2644 = vst [vmem:[#allocation8_spill] sm:$0xff] %v2120_v20  ;;  %v1124_v34 = vsel %vm434_vm1, %v2120_v20, 0.0  ;;  %v1134_v47 = vmul.f32 %v2120_v20, %v2120_v20 }
 0x146   :  { %534 = vadd.xlane.f32.xlu2 %v533_v8  ;;  %v631_v16 = vpop.xlane.xlu0 %630 }
 0x147   :  { %v710_v48 = vmul.f32 0.0078125, %v638_v46  ;;  %v639_v23 = vadd.f32 %v631_v16, %v502_v27 }
 0x148   :  { %v614_v25 = vpop.xlane.xlu1 %613 }
 0x149   :  { %v718_v54 = vsub.f32 %v710_v48, %v714_v53  ;;  %v711_v58 = vmul.f32 0.0078125, %v639_v23  ;;  %v2102_v45 = vadd.f32 %v614_v25, %v485_v6 }
 0x14b   :  { %v2100_v39 = vmax.f32 %v718_v54, 0.0  ;;  %v719_v61 = vsub.f32 %v711_v58, %v715_v60  ;;  %v2111_v40 = vmul.f32 0.0078125, %v2102_v45 }
 0x14c   :  { %v505_v41 = vpop.xlane.xlu2 %504  ;;  %1010 = vadd.xlane.f32.xlu1 %v1009_v17  ;;  %v668_v17 = vsel %vm476_vm3, %v1867_v37, 0.0 }
 0x14d   :  { %v726_v13 = vadd.f32 1e-05, %v2100_v39  ;;  %v2107_v63 = vmax.f32 %v719_v61, 0.0  ;;  %v716_v11 = vmul.f32 %v2111_v40, %v2111_v40 }
 0x14e   :  { %666 = vadd.xlane.f32.xlu2 %v665_v0  ;;  %v617_v2 = vpop.xlane.xlu0 %616 }
 0x14f   :  { %1542 = vrsqrt.f32 %v726_v13  ;;  %v727_v9 = vadd.f32 1e-05, %v2107_v63  ;;  %vm736_vm14 = vweird.f32 %v726_v13 }
 0x150   :  { %v634_v4 = vpop.xlane.xlu1 %633 }
 0x151   :  { %1544 = vrsqrt.f32 %v727_v9  ;;  %v640_v22 = vadd.f32 %v634_v4, %v505_v41  ;;  %vm746_vm12 = vweird.f32 %v727_v9 }
 0x153   :  { %v712_v62 = vmul.f32 0.0078125, %v640_v22 }
 0x154   :  { %1139 = vadd.xlane.f32.xlu1 %v1138_v14  ;;  %v508_v27 = vpop.xlane.xlu2 %507 }
 0x155   :  { %v1543_v21 = vpop.eup %1542  ;;  %v720_v6 = vsub.f32 %v712_v62, %v716_v11  ;;  %v644_v11 = vmul.f32 %v1867_v37, %v1926_v3  ;;  %v1144_v37 = vsel %vm434_vm1, %v1134_v47, 0.0 }
 0x156   :  { %v731_v24 = vmul.f32 %v1543_v21, %v726_v13  ;;  %540 = vadd.xlane.f32.xlu2 %v539_v36  ;;  %v637_v33 = vpop.xlane.xlu0 %636  ;;  %vm737_vm11 = vweird.f32 %v1543_v21 }
 0x157   :  { %v1545_v8 = vpop.eup %1544  ;;  %v2122_v35 = vmax.f32 %v720_v6, 0.0  ;;  %v641_v46 = vadd.f32 %v637_v33, %v508_v27  ;;  %v697_v27 = vadd.f32 %v2051_v1, %v2072_v12  ;;  %vm738_vm15 = vmor %vm736_vm14, %vm737_vm11  ;;  %v698_v1 = vld [vmem:[%s2620_s8] sm:$0xff]  ;;  %v652_v13 = vsel %vm476_vm3, %v644_v11, 0.0 }
 0x158   :  { %v732_v16 = vmul.f32 %v1543_v21, %v731_v24  ;;  %v741_v44 = vmul.f32 %v1545_v8, %v727_v9  ;;  %v488_v48 = vpop.xlane.xlu1 %487  ;;  %vm747_vm10 = vweird.f32 %v1545_v8  ;;  %v699_v24 = vld [vmem:[%s2620_s8 + $0x8] sm:$0xff] }
 0x159   :  { %v728_v53 = vadd.f32 1e-05, %v2122_v35  ;;  %v2125_v23 = vadd.f32 %v617_v2, %v488_v48  ;;  %v713_v58 = vmul.f32 0.0078125, %v641_v46  ;;  %vm748_vm13 = vmor %vm746_vm12, %vm747_vm10 }
 0x15a   :  { %v733_v25 = vmul.f32 0.5, %v732_v16  ;;  %v742_v54 = vmul.f32 %v1545_v8, %v741_v44 }
 0x15b   :  { %1546 = vrsqrt.f32 %v728_v53  ;;  %v2130_v60 = vmul.f32 0.0078125, %v2125_v23  ;;  %vm756_vm4 = vweird.f32 %v728_v53 }
 0x15c   :  { %v743_v61 = vmul.f32 0.5, %v742_v54  ;;  %1125 = vadd.xlane.f32.xlu1 %v1124_v34  ;;  %v734_v0 = vsub.f32 1.5, %v733_v25  ;;  %v645_v34 = vmul.f32 %v1887_v50, %v1938_v15 }
 0x15d   :  { %v717_v41 = vmul.f32 %v2130_v60, %v2130_v60 }
 0x15e   :  { %v744_v2 = vsub.f32 1.5, %v743_v61  ;;  %669 = vadd.xlane.f32.xlu2 %v668_v17  ;;  %v735_v14 = vmul.f32 %v1543_v21, %v734_v0  ;;  %v794_v61 = vmul.f32 128.0, %v2088_v38  ;;  %v2174_v0 = vld [vmem:[%s2621_s9 + $0x8] sm:$0xff]  ;;  %v655_v11 = vsel %vm476_vm3, %v645_v34, 0.0 }
 0x15f   :  { %v721_v4 = vsub.f32 %v713_v58, %v717_v41  ;;  %v700_v58 = vld [vmem:[%s2620_s8 + $0x10] sm:$0xff] }
 0x160   :  { %v745_v22 = vmul.f32 %v1545_v8, %v744_v2  ;;  %v739_v12 = vsel %vm738_vm15, %v1543_v21, %v735_v14 }
 0x161   :  { %v1547_v62 = vpop.eup %1546  ;;  %v2140_v36 = vmax.f32 %v721_v4, 0.0  ;;  %v2159_v44 = vmul.f32 %v739_v12, %v698_v1 }
 0x162   :  { %v751_v6 = vmul.f32 %v1547_v62, %v728_v53  ;;  %v749_v33 = vsel %vm748_vm13, %v1545_v8, %v745_v22  ;;  %v843_v8 = vsel %vm332_vm2, %v697_v27, 0.0  ;;  %vm757_vm0 = vweird.f32 %v1547_v62  ;;  %v2183_v53 = vld [vmem:[%s2621_s9] sm:$0xff] }
 0x163   :  { %v2148_v46 = vadd.f32 1e-05, %v2140_v36  ;;  %v2155_v9 = vmul.f32 %v749_v33, %v699_v24  ;;  %v844_v25 = vadd.f32 %v843_v8, %v2038_v30  ;;  %vm758_vm5 = vmor %vm756_vm4, %vm757_vm0  ;;  %v795_v30 = vmul.f32 128.0, %v2093_v55 }
 0x164   :  { %v752_v3 = vmul.f32 %v1547_v62, %v751_v6  ;;  %1145 = vadd.xlane.f32.xlu1 %v1144_v37  ;;  %v774_v41 = vmul.f32 %v2159_v44, %v2159_v44  ;;  %v786_v2 = vmul.f32 2.0, %v2159_v44  ;;  %v796_v6 = vmul.f32 128.0, %v2111_v40 }
 0x165   :  { %1548 = vrsqrt.f32 %v2148_v46  ;;  %v775_v21 = vmul.f32 %v2155_v9, %v2155_v9  ;;  %v787_v54 = vmul.f32 2.0, %v2155_v9  ;;  %vm766_vm7 = vweird.f32 %v2148_v46 }
 0x166   :  { %v753_v16 = vmul.f32 0.5, %v752_v3  ;;  %653 = vadd.xlane.f32.xlu2 %v652_v13  ;;  %v798_v3 = vsub.f32 %v2079_v7, %v794_v61  ;;  %v778_v1 = vmul.f32 %v774_v41, %v2100_v39  ;;  %v790_v12 = vmul.f32 %v786_v2, %v2183_v53 }
 0x167   :  { %v779_v14 = vmul.f32 %v775_v21, %v2107_v63  ;;  %v791_v27 = vmul.f32 %v787_v54, %v2174_v0  ;;  %v799_v63 = vsub.f32 %v2083_v26, %v795_v30  ;;  %v800_v21 = vsub.f32 %v2102_v45, %v796_v6 }
 0x168   :  { %v754_v48 = vsub.f32 1.5, %v753_v16  ;;  %v811_v7 = vmul.f32 128.0, %v2174_v0  ;;  %v810_v26 = vmul.f32 128.0, %v2183_v53  ;;  %v514_v41 = vmul.f32 %v1909_v57, %v1844_v28  ;;  %v2234_v57 = vld [vmem:[%s2621_s9 + $0x18] sm:$0xff] }
 0x169   :  { %v783_v34 = vmul.f32 128.0, %v779_v14 }
 0x16a   :  { %v755_v17 = vmul.f32 %v1547_v62, %v754_v48  ;;  %v662_v48 = vsel %vm476_vm3, %v1829_v5, 0.0  ;;  %v701_v5 = vld [vmem:[%s2620_s8 + $0x18] sm:$0xff]  ;;  %v815_v2 = vmul.f32 %v811_v7, %v2174_v0  ;;  %v814_v14 = vmul.f32 %v810_v26, %v2183_v53 }
 0x16b   :  { %v1549_v15 = vpop.eup %1548 }
 0x16c   :  { %v759_v47 = vsel %vm758_vm5, %v1547_v62, %v755_v17  ;;  %845 = vadd.xlane.f32.xlu1 %v844_v25  ;;  %v761_v22 = vmul.f32 %v1549_v15, %v2148_v46  ;;  %v2195_v62 = vld [vmem:[%s2621_s9 + $0x10] sm:$0xff]  ;;  %v803_v25 = vmul.f32 %v799_v63, %v791_v27  ;;  %vm767_vm6 = vweird.f32 %v1549_v15 }
 0x16d   :  { %v2185_v4 = vmul.f32 %v759_v47, %v700_v58  ;;  %v812_v39 = vmul.f32 128.0, %v2195_v62  ;;  %v782_v58 = vmul.f32 128.0, %v778_v1  ;;  %vm768_vm8 = vmor %vm766_vm7, %vm767_vm6  ;;  %v2222_v47 = vld [vmem:[%s2623_s11 + $0x20] sm:$0xff] }
 0x16e   :  { %656 = vadd.xlane.f32.xlu2 %v655_v11  ;;  %v762_v37 = vmul.f32 %v1549_v15, %v761_v22  ;;  %v807_v45 = vadd.f32 %v803_v25, %v783_v34  ;;  %v797_v22 = vmul.f32 128.0, %v2130_v60  ;;  %v1187_v46 = vmul.f32 %v2222_v47, %v2222_v47 }
 0x16f   :  { %v776_v24 = vmul.f32 %v2185_v4, %v2185_v4  ;;  %v788_v33 = vmul.f32 2.0, %v2185_v4  ;;  %v816_v28 = vmul.f32 %v812_v39, %v2195_v62 }
 0x170   :  { %v763_v8 = vmul.f32 0.5, %v762_v37  ;;  %v819_v63 = vadd.f32 %v815_v2, %v807_v45  ;;  %v801_v1 = vsub.f32 %v2125_v23, %v797_v22  ;;  %v671_v22 = vsel %vm476_vm3, %v1887_v50, 0.0  ;;  %v2281_v50 = vld [vmem:[%s2623_s11 + $0x8] sm:$0xff] }
 0x171   :  { %v780_v13 = vmul.f32 %v776_v24, %v2122_v35  ;;  %v792_v16 = vmul.f32 %v788_v33, %v2195_v62  ;;  %v802_v35 = vmul.f32 %v798_v3, %v790_v12  ;;  %v1191_v33 = vsel %vm434_vm1, %v1187_v46, 0.0  ;;  %v2272_v46 = vld [vmem:[%s2623_s11] sm:$0xff] }
 0x172   :  { %v764_v54 = vsub.f32 1.5, %v763_v8  ;;  %v813_v3 = vmul.f32 128.0, %v2234_v57  ;;  %v520_v12 = vsel %vm476_vm3, %v514_v41, 0.0  ;;  %v823_v7 = vsel %vm332_vm2, %v819_v63, 0.0 }
 0x173   :  { %v784_v17 = vmul.f32 128.0, %v780_v13  ;;  %v804_v61 = vmul.f32 %v800_v21, %v792_v16  ;;  %v806_v27 = vadd.f32 %v802_v35, %v782_v58  ;;  %v542_v41 = vsel %vm476_vm3, %v1900_v52, 0.0 }
 0x174   :  { %663 = vadd.xlane.f32.xlu1 %v662_v48  ;;  %v765_v30 = vmul.f32 %v1549_v15, %v764_v54  ;;  %v817_v21 = vmul.f32 %v813_v3, %v2234_v57  ;;  %v643_v54 = vmul.f32 %v1854_v32, %v1907_v56 }
 0x175   :  { %v808_v6 = vadd.f32 %v804_v61, %v784_v17  ;;  %v818_v8 = vadd.f32 %v814_v14, %v806_v27  ;;  %v516_v14 = vmul.f32 %v1942_v19, %v1900_v52  ;;  %v1058_v27 = vmul.f32 %v2272_v46, %v2272_v46 }
 0x176   :  { %v769_v11 = vsel %vm768_vm8, %v1549_v15, %v765_v30  ;;  %1192 = vadd.xlane.f32.xlu2 %v1191_v33  ;;  %v649_v17 = vsel %vm476_vm3, %v643_v54, 0.0  ;;  %v2258_v30 = vld [vmem:[%s2623_s11 + $0x30] sm:$0xff]  ;;  %v1059_v19 = vmul.f32 %v2281_v50, %v2281_v50 }
 0x177   :  { %v2228_v24 = vmul.f32 %v769_v11, %v701_v5  ;;  %v820_v48 = vadd.f32 %v816_v28, %v808_v6  ;;  %v822_v23 = vsel %vm332_vm2, %v818_v8, 0.0  ;;  %v1189_v56 = vmul.f32 %v2258_v30, %v2258_v30  ;;  %v1117_v11 = vpop.xlane.xlu0 %1116 }
 0x178   :  { %v824_v58 = vadd.f32 %v823_v7, %v822_v23  ;;  %v526_v6 = vsel %vm476_vm3, %v516_v14, 0.0  ;;  %v1062_v28 = vsel %vm434_vm1, %v1058_v27, 0.0  ;;  %v1065_v3 = vsel %vm434_vm1, %v1059_v19, 0.0 }
 0x179   :  { %v777_v15 = vmul.f32 %v2228_v24, %v2228_v24  ;;  %v789_v37 = vmul.f32 2.0, %v2228_v24  ;;  %v825_v39 = vsel %vm332_vm2, %v820_v48, 0.0  ;;  %v1197_v45 = vsel %vm434_vm1, %v1189_v56, 0.0 }
 0x17a   :  { %v826_v61 = vadd.f32 %v825_v39, %v824_v58 }
 0x17b   :  { %v781_v13 = vmul.f32 %v777_v15, %v2140_v36  ;;  %v793_v16 = vmul.f32 %v789_v37, %v2234_v57  ;;  %v2251_v36 = vpop.xlane.xlu2 %990  ;;  %v2288_v15 = vld [vmem:[%s2623_s11 + $0x28] sm:$0xff] }
 0x17c   :  { %521 = vadd.xlane.f32.xlu1 %v520_v12  ;;  %v1188_v37 = vmul.f32 %v2288_v15, %v2288_v15 }
 0x17d   :  { %v785_v34 = vmul.f32 128.0, %v781_v13  ;;  %v805_v25 = vmul.f32 %v801_v1, %v793_v16  ;;  %v2297_v1 = vld [vmem:[%s2623_s11 + $0x10] sm:$0xff]  ;;  %v2304_v13 = vld [vmem:[%s2623_s11 + $0x18] sm:$0xff] }
 0x17e   :  { %1198 = vadd.xlane.f32.xlu2 %v1197_v45  ;;  %v1194_v63 = vsel %vm434_vm1, %v1188_v37, 0.0  ;;  %v1060_v12 = vmul.f32 %v2297_v1, %v2297_v1  ;;  %2645 = vst [vmem:[#allocation9_spill] sm:$0xff] %v2304_v13  ;;  %v1061_v8 = vmul.f32 %v2304_v13, %v2304_v13 }
 0x17f   :  { %v809_v26 = vadd.f32 %v805_v25, %v785_v34  ;;  %v1008_v33 = vpop.xlane.xlu0 %1007  ;;  %v2312_v25 = vadd.f32 %v1117_v11, %v2060_v10 }
 0x180   :  { %v1068_v34 = vsel %vm434_vm1, %v1060_v12, 0.0  ;;  %v1071_v54 = vsel %vm434_vm1, %v1061_v8, 0.0 }
 0x181   :  { %v821_v35 = vadd.f32 %v817_v21, %v809_v26  ;;  %v2317_v21 = vld [vmem:[%s2623_s11 + $0x38] sm:$0xff]  ;;  %v2323_v23 = vmul.f32 0.03125, %v2312_v25 }
 0x182   :  { %v1190_v26 = vmul.f32 %v2317_v21, %v2317_v21 }
 0x183   :  { %v827_v5 = vsel %vm332_vm2, %v821_v35, 0.0  ;;  %v994_v2 = vpop.xlane.xlu2 %993  ;;  %2646 = vst [vmem:[#allocation10_spill] sm:$0xff] %v2323_v23 }
 0x184   :  { %650 = vadd.xlane.f32.xlu1 %v649_v17  ;;  %v828_v32 = vadd.f32 %v827_v5, %v826_v61  ;;  %v1200_v35 = vsel %vm434_vm1, %v1190_v26, 0.0  ;;  %v1223_v17 = vmul.f32 %v2323_v23, %v2323_v23 }
 0x186   :  { %829 = vadd.xlane.f32.xlu0 %v828_v32  ;;  %v1045_v32 = vsel %vm434_vm1, %v2281_v50, 0.0 }
 0x187   :  { %v1137_v48 = vpop.xlane.xlu0 %1136 }
 0x188   :  { %v1147_v7 = vadd.f32 %v1137_v48, %v1008_v33 }
 0x18a   :  { %v1219_v39 = vmul.f32 0.03125, %v1147_v7 }
 0x18b   :  { %v1123_v52 = vpop.xlane.xlu2 %1122 }
 0x18c   :  { %543 = vadd.xlane.f32.xlu1 %v542_v41  ;;  %v2325_v58 = vadd.f32 %v1123_v52, %v994_v2  ;;  %v1227_v61 = vsub.f32 %v1219_v39, %v1223_v17  ;;  %v350_v41 = vrot.slane %v1986_v49, 4  ;;  %v1120_v2 = vpop.xlane.xlu1 %1119 }
 0x18e   :  { %672 = vadd.xlane.f32.xlu0 %v671_v22  ;;  %v2333_v56 = vmul.f32 0.03125, %v2325_v58  ;;  %v2336_v22 = vmax.f32 %v1227_v61, 0.0  ;;  %v351_v52 = vadd.f32 %v350_v41, %v1986_v49 }
 0x18f   :  { %v1014_v5 = vpop.xlane.xlu0 %1013 }
 0x190   :  { %2647 = vst [vmem:[#allocation11_spill] sm:$0xff] %v2333_v56  ;;  %v1225_v11 = vmul.f32 %v2333_v56, %v2333_v56  ;;  %v1235_v19 = vadd.f32 1e-05, %v2336_v22 }
 0x192   :  { %1550 = vrsqrt.f32 %v1235_v19  ;;  %vm1245_vm9 = vweird.f32 %v1235_v19 }
 0x193   :  { %v2306_v16 = vpop.xlane.xlu2 %996 }
 0x194   :  { %527 = vadd.xlane.f32.xlu1 %v526_v6 }
 0x196   :  { %1063 = vadd.xlane.f32.xlu0 %v1062_v28  ;;  %v1022_v28 = vmul.f32 %v1895_v18, %v2272_v46 }
 0x198   :  { %v1551_v39 = vpop.eup %1550 }
 0x199   :  { %vm1246_vm3 = vweird.f32 %v1551_v39 }
 0x19a   :  { %vm1247_vm10 = vmor %vm1245_vm9, %vm1246_vm3 }
 0x19b   :  { %v1143_v10 = vpop.xlane.xlu2 %1142 }
 0x19c   :  { %1066 = vadd.xlane.f32.xlu1 %v1065_v3  ;;  %v1149_v45 = vadd.f32 %v1143_v10, %v1014_v5  ;;  %v1026_v3 = vsel %vm434_vm1, %v1022_v28, 0.0 }
 0x19e   :  { %1195 = vadd.xlane.f32.xlu0 %v1194_v63  ;;  %v1221_v14 = vmul.f32 0.03125, %v1149_v45  ;;  %v352_v63 = vrot.slane %v351_v52, 2 }
 0x1a0   :  { %v1229_v37 = vsub.f32 %v1221_v14, %v1225_v11  ;;  %v2349_v11 = vadd.f32 %v1120_v2, %v2251_v36 }
 0x1a4   :  { %1069 = vadd.xlane.f32.xlu1 %v1068_v34  ;;  %v2345_v34 = vmax.f32 %v1229_v37, 0.0 }
 0x1a6   :  { %1072 = vadd.xlane.f32.xlu0 %v1071_v54  ;;  %v353_v54 = vadd.f32 %v352_v63, %v351_v52  ;;  %v1237_v49 = vadd.f32 1e-05, %v2345_v34  ;;  %v2352_v52 = vmul.f32 0.03125, %v2349_v11 }
 0x1a8   :  { %v354_v17 = vrot.slane %v353_v54, 1  ;;  %1552 = vrsqrt.f32 %v1237_v49  ;;  %2648 = vst [vmem:[#allocation12_spill] sm:$0xff] %v2352_v52  ;;  %vm1265_vm11 = vweird.f32 %v1237_v49 }
 0x1aa   :  { %v355_v41 = vadd.f32 %v354_v17, %v353_v54 }
 0x1ac   :  { %1201 = vadd.xlane.f32.xlu1 %v1200_v35 }
 0x1ae   :  { %1046 = vadd.xlane.f32.xlu0 %v1045_v32  ;;  %v1240_v32 = vmul.f32 %v1551_v39, %v1235_v19 }
 0x1b1   :  { %v371_v27 = vpop.xlane.xlu2 %370 }
 0x1b2   :  { %v372_v6 = vrot.slane %v371_v27, 4 }
 0x1b4   :  { %v373_v33 = vadd.f32 %v372_v6, %v371_v27  ;;  %v1241_v27 = vmul.f32 %v1551_v39, %v1240_v32  ;;  %v1553_v6 = vpop.eup %1552 }
 0x1b5   :  { %v1260_v63 = vmul.f32 %v1553_v6, %v1237_v49  ;;  %vm1266_vm12 = vweird.f32 %v1553_v6 }
 0x1b6   :  { %1027 = vadd.xlane.f32.xlu0 %v1026_v3  ;;  %v374_v8 = vrot.slane %v373_v33, 2  ;;  %v1242_v37 = vmul.f32 0.5, %v1241_v27  ;;  %v1017_v3 = vpop.xlane.xlu0 %1016  ;;  %vm2376_vm13 = vmor %vm1265_vm11, %vm1266_vm12 }
 0x1b7   :  { %v337_v12 = vpop.xlane.xlu1 %336 }
 0x1b8   :  { %v338_v48 = vrot.slane %v337_v12, 4  ;;  %v375_v18 = vadd.f32 %v374_v8, %v373_v33  ;;  %v1243_v2 = vsub.f32 1.5, %v1242_v37 }
 0x1b9   :  { %v2359_v17 = vpop.xlane.xlu2 %534 }
 0x1ba   :  { %v339_v7 = vadd.f32 %v338_v48, %v337_v12  ;;  %v376_v5 = vrot.slane %v375_v18, 1  ;;  %v1224_v12 = vmul.f32 %v2352_v52, %v2352_v52  ;;  %v1261_v48 = vmul.f32 %v1553_v6, %v1260_v63 }
 0x1bc   :  { %v340_v26 = vrot.slane %v339_v7, 2  ;;  %v377_v14 = vadd.f32 %v376_v5, %v375_v18  ;;  %v1244_v18 = vmul.f32 %v1551_v39, %v1243_v2  ;;  %v1207_v5 = vld [vmem:[%s2625_s13] sm:$0xff] }
 0x1be   :  { %v341_v10 = vadd.f32 %v340_v26, %v339_v7  ;;  %v1248_v32 = vsel %vm1247_vm10, %v1551_v39, %v1244_v18 }
 0x1bf   :  { %v1011_v35 = vpop.xlane.xlu1 %1010 }
 0x1c0   :  { %v342_v61 = vrot.slane %v341_v10, 1 }
 0x1c1   :  { %v2383_v2 = vpop.xlane.xlu2 %666 }
 0x1c2   :  { %v343_v45 = vadd.f32 %v342_v61, %v341_v10  ;;  %v1262_v10 = vmul.f32 0.5, %v1261_v48  ;;  %v2364_v61 = vpop.xlane.xlu0 %537 }
 0x1c4   :  { %1504 = vpush %v343_v45  ;;  %v1263_v45 = vsub.f32 1.5, %v1262_v10  ;;  %v1209_v10 = vld [vmem:[%s2625_s13 + $0x10] sm:$0xff] }
 0x1c5   :  { %1506 = vpush %v355_v41 }
 0x1c6   :  { %1508 = vpush %v377_v14 }
 0x1c7   :  { %v1140_v28 = vpop.xlane.xlu1 %1139 }
 0x1c8   :  { %v1148_v33 = vadd.f32 %v1140_v28, %v1011_v35  ;;  %v2372_v28 = vmul.f32 %v1248_v32, %v1207_v5 }
 0x1ca   :  { %v1220_v8 = vmul.f32 0.03125, %v1148_v33  ;;  %2649 = vst [vmem:[#allocation13_spill] sm:$0xff] %v2372_v28  ;;  %v1264_v33 = vmul.f32 %v1553_v6, %v1263_v45  ;;  %v2391_v18 = vpop.xlane.xlu0 %518 }
 0x1cc   :  { %v1228_v36 = vsub.f32 %v1220_v8, %v1224_v12  ;;  %v1283_v8 = vmul.f32 %v2372_v28, %v2372_v28  ;;  %v1268_v5 = vsel %vm2376_vm13, %v1553_v6, %v1264_v33 }
 0x1ce   :  { %v2356_v7 = vmax.f32 %v1228_v36, 0.0  ;;  %v1295_v36 = vmul.f32 2.0, %v2372_v28 }
 0x1cf   :  { %v1126_v54 = vpop.xlane.xlu1 %1125 }
 0x1d0   :  { %v1236_v26 = vadd.f32 1e-05, %v2356_v7  ;;  %v2362_v35 = vadd.f32 %v1126_v54, %v2306_v16  ;;  %v1303_v54 = vmul.f32 32.0, %v2323_v23 }
 0x1d2   :  { %1554 = vrsqrt.f32 %v1236_v26  ;;  %v2370_v41 = vmul.f32 0.03125, %v2362_v35  ;;  %vm1255_vm15 = vweird.f32 %v1236_v26  ;;  %v1307_v6 = vsub.f32 %v2312_v25, %v1303_v54  ;;  %v2421_v25 = vld [vmem:[%s2626_s14 + $0x8] sm:$0xff] }
 0x1d4   :  { %v1226_v37 = vmul.f32 %v2370_v41, %v2370_v41 }
 0x1d7   :  { %v1146_v14 = vpop.xlane.xlu1 %1145 }
 0x1d8   :  { %v1555_v27 = vpop.eup %1554  ;;  %v1150_v16 = vadd.f32 %v1146_v14, %v1017_v3  ;;  %v2388_v3 = vld [vmem:[%s2626_s14] sm:$0xff] }
 0x1d9   :  { %v1250_v19 = vmul.f32 %v1555_v27, %v1236_v26  ;;  %2652 = vst [vmem:[#allocation14_spill] sm:$0xff] %v2388_v3  ;;  %vm1256_vm14 = vweird.f32 %v1555_v27 }
 0x1da   :  { %v1222_v63 = vmul.f32 0.03125, %v1150_v16  ;;  %v1287_v16 = vmul.f32 %v1283_v8, %v2336_v22  ;;  %vm1257_vm0 = vmor %vm1255_vm15, %vm1256_vm14 }
 0x1db   :  { %v1251_v39 = vmul.f32 %v1555_v27, %v1250_v19  ;;  %v1299_v19 = vmul.f32 %v1295_v36, %v2388_v3  ;;  %v1304_v36 = vmul.f32 32.0, %v2352_v52 }
 0x1dc   :  { %v1230_v49 = vsub.f32 %v1222_v63, %v1226_v37  ;;  %v2405_v63 = vmul.f32 %v1268_v5, %v1209_v10  ;;  %v1291_v22 = vmul.f32 32.0, %v1287_v16  ;;  %v1305_v10 = vmul.f32 32.0, %v2333_v56 }
 0x1dd   :  { %v1252_v48 = vmul.f32 0.5, %v1251_v39  ;;  %v1208_v39 = vld [vmem:[%s2625_s13 + $0x8] sm:$0xff]  ;;  %v1311_v8 = vmul.f32 %v1307_v6, %v1299_v19  ;;  %v1320_v16 = vmul.f32 32.0, %v2421_v25  ;;  %v2433_v19 = vld [vmem:[%s2626_s14 + $0x10] sm:$0xff]  ;;  %v1308_v28 = vsub.f32 %v2349_v11, %v1304_v36 }
 0x1de   :  { %v2398_v32 = vmax.f32 %v1230_v49, 0.0  ;;  %2653 = vst [vmem:[#allocation15_spill] sm:$0xff] %v2405_v63  ;;  %v1319_v49 = vmul.f32 32.0, %v2388_v3  ;;  %v1285_v5 = vmul.f32 %v2405_v63, %v2405_v63  ;;  %v1297_v26 = vmul.f32 2.0, %v2405_v63  ;;  %v2436_v63 = vpop.xlane.xlu0 %647 }
 0x1df   :  { %v1253_v45 = vsub.f32 1.5, %v1252_v48  ;;  %v2400_v14 = vpop.xlane.xlu1 %845  ;;  %v1309_v23 = vsub.f32 %v2325_v58, %v1305_v10  ;;  %v1321_v58 = vmul.f32 32.0, %v2433_v19 }
 0x1e0   :  { %v1238_v37 = vadd.f32 1e-05, %v2398_v32  ;;  %v1289_v52 = vmul.f32 %v1285_v5, %v2345_v34  ;;  %v1301_v13 = vmul.f32 %v1297_v26, %v2433_v19  ;;  %v2460_v26 = vld [vmem:[%s2626_s14 + $0x18] sm:$0xff] }
 0x1e1   :  { %v1254_v12 = vmul.f32 %v1555_v27, %v1253_v45  ;;  %v2427_v45 = vpop.xlane.xlu2 %540 }
 0x1e2   :  { %1556 = vrsqrt.f32 %v1238_v37  ;;  %v1293_v11 = vmul.f32 32.0, %v1289_v52  ;;  %v1313_v36 = vmul.f32 %v1309_v23, %v1301_v13  ;;  %vm1275_vm5 = vweird.f32 %v1238_v37 }
 0x1e3   :  { %v1258_v33 = vsel %vm1257_vm0, %v1555_v27, %v1254_v12  ;;  %v1323_v12 = vmul.f32 %v1319_v49, %v2388_v3  ;;  %v1324_v49 = vmul.f32 %v1320_v16, %v2421_v25  ;;  %v675_v23 = vadd.f32 %v2383_v2, %v2364_v61 }
 0x1e4   :  { %v2413_v48 = vmul.f32 %v1258_v33, %v1208_v39  ;;  %v1315_v33 = vadd.f32 %v1311_v8, %v1291_v22  ;;  %v1306_v52 = vmul.f32 32.0, %v2370_v41 }
 0x1e6   :  { %2654 = vst [vmem:[#allocation16_spill] sm:$0xff] %v2413_v48  ;;  %v1284_v27 = vmul.f32 %v2413_v48, %v2413_v48  ;;  %v1296_v54 = vmul.f32 2.0, %v2413_v48  ;;  %v1327_v3 = vadd.f32 %v1323_v12, %v1315_v33  ;;  %v525_v13 = vpop.xlane.xlu0 %524  ;;  %v1310_v33 = vsub.f32 %v2362_v35, %v1306_v52 }
 0x1e7   :  { %v664_v39 = vpop.xlane.xlu1 %663 }
 0x1e8   :  { %v1557_v6 = vpop.eup %1556  ;;  %v1288_v48 = vmul.f32 %v1284_v27, %v2356_v7  ;;  %v1300_v56 = vmul.f32 %v1296_v54, %v2421_v25  ;;  %v1331_v10 = vsel %vm332_vm2, %v1327_v3, 0.0  ;;  %v1325_v3 = vmul.f32 %v1321_v58, %v2433_v19 }
 0x1e9   :  { %v1270_v59 = vmul.f32 %v1557_v6, %v1238_v37  ;;  %vm1276_vm4 = vweird.f32 %v1557_v6  ;;  %v670_v34 = vpop.xlane.xlu2 %669  ;;  %v1322_v37 = vmul.f32 32.0, %v2460_v26  ;;  %v674_v2 = vadd.f32 %v664_v39, %v2359_v17 }
 0x1ea   :  { %v1292_v20 = vmul.f32 32.0, %v1288_v48  ;;  %v1312_v43 = vmul.f32 %v1308_v28, %v1300_v56  ;;  %v1586_v56 = vmov 2.0   ;;  %vm1277_vm6 = vmor %vm1275_vm5, %vm1276_vm4 }
 0x1eb   :  { %v1271_v22 = vmul.f32 %v1557_v6, %v1270_v59  ;;  %1558 = vrcp.f32 %v1586_v56 }
 0x1ec   :  { %v1316_v8 = vadd.f32 %v1312_v43, %v1292_v20  ;;  %v1210_v43 = vld [vmem:[%s2625_s13 + $0x18] sm:$0xff] }
 0x1ed   :  { %v1272_v51 = vmul.f32 0.5, %v1271_v22 }
 0x1ee   :  { %v1328_v7 = vadd.f32 %v1324_v49, %v1316_v8  ;;  %v847_v49 = vrot.slane %v2400_v14, 4 }
 0x1ef   :  { %v1273_v27 = vsub.f32 1.5, %v1272_v51  ;;  %v522_v54 = vpop.xlane.xlu1 %521  ;;  %v1317_v51 = vadd.f32 %v1313_v36, %v1293_v11 }
 0x1f0   :  { %v1332_v48 = vsel %vm332_vm2, %v1328_v7, 0.0 }
 0x1f1   :  { %v1274_v59 = vmul.f32 %v1557_v6, %v1273_v27  ;;  %v1333_v20 = vadd.f32 %v1332_v48, %v1331_v10  ;;  %v2465_v16 = vpop.eup %1558  ;;  %v1329_v8 = vadd.f32 %v1325_v3, %v1317_v51  ;;  %v654_v58 = vpop.xlane.xlu2 %653  ;;  %v854_v10 = vmul.f32 %v2088_v38, %v674_v2 }
 0x1f2   :  { %v415_v35 = vmul.f32 2.0, %v2465_v16  ;;  %v660_v52 = vadd.f32 %v654_v58, %v525_v13  ;;  %v867_v13 = vmul.f32 %v2174_v0, %v675_v23  ;;  %v866_v58 = vmul.f32 %v2183_v53, %v674_v2 }
 0x1f3   :  { %v1278_v28 = vsel %vm1277_vm6, %v1557_v6, %v1274_v59  ;;  %v855_v6 = vmul.f32 %v2093_v55, %v675_v23  ;;  %v1326_v55 = vmul.f32 %v1322_v37, %v2460_v26  ;;  %v658_v59 = vadd.f32 %v2436_v63, %v2391_v18 }
 0x1f4   :  { %v2455_v5 = vmul.f32 %v1278_v28, %v1210_v43  ;;  %v848_v28 = vadd.f32 %v847_v49, %v2400_v14  ;;  %v1334_v38 = vsel %vm332_vm2, %v1329_v8, 0.0  ;;  %v1151_v18 = vmul.f32 %v2222_v47, %v1958_v29 }
 0x1f5   :  { %s2462_s13 = spop %1504  ;;  %v858_v37 = vsub.f32 %v658_v59, %v854_v10  ;;  %vm419_vm7 = vweird.f32 %v2465_v16 }
 0x1f6   :  { %v1286_v61 = vmul.f32 %v2455_v5, %v2455_v5  ;;  %s379_s19 = sadd.f32 1e-12, %s2462_s13  ;;  %s2471_s20 = spop %1506  ;;  %v1298_v12 = vmul.f32 2.0, %v2455_v5  ;;  %v1155_v23 = vsel %vm434_vm1, %v1151_v18, 0.0 }
 0x1f7   :  { %s392_s14 = sadd.f32 1e-12, %s2471_s20  ;;  %v651_v22 = vpop.xlane.xlu1 %650  ;;  %s1509_s21 = spop %1508 }
 0x1f8   :  { %v1290_v11 = vmul.f32 %v1286_v61, %v2398_v32  ;;  %v2479_v36 = vstv %s379_s19  ;;  %v659_v17 = vadd.f32 %v651_v22, %v522_v54  ;;  %v1302_v39 = vmul.f32 %v1298_v12, %v2460_v26  ;;  %s410_s22 = smul.f32 2.0, %s1509_s21 }
 0x1f9   :  { %1560 = vrsqrt.f32 %v2479_v36  ;;  %v2483_v7 = vstv %s392_s14  ;;  %v830_v32 = vpop.xlane.xlu0 %829  ;;  %v676_v54 = vadd.f32 %v670_v34, %v2427_v45  ;;  %v416_v12 = vsub.f32 1.0, %v415_v35 }
 0x1fa   :  { %v1294_v27 = vmul.f32 32.0, %v1290_v11  ;;  %1562 = vrsqrt.f32 %v2483_v7  ;;  %v1314_v48 = vmul.f32 %v1310_v33, %v1302_v39  ;;  %v859_v56 = vsub.f32 %v659_v17, %v855_v6 }
 0x1fb   :  { %v831_v43 = vrot.slane %v830_v32, 4  ;;  %v856_v33 = vmul.f32 %v2111_v40, %v676_v54  ;;  %v1335_v6 = vadd.f32 %v1334_v38, %v1333_v20  ;;  %v849_v17 = vrot.slane %v848_v28, 2 }
 0x1fc   :  { %v1318_v51 = vadd.f32 %v1314_v48, %v1294_v27  ;;  %v863_v45 = vmul.f32 %v859_v56, %v2155_v9  ;;  %v862_v9 = vmul.f32 %v858_v37, %v2159_v44  ;;  %v417_v35 = vmul.f32 %v2465_v16, %v416_v12 }
 0x1fd   :  { %v832_v3 = vadd.f32 %v831_v43, %v830_v32  ;;  %v860_v8 = vsub.f32 %v660_v52, %v856_v33  ;;  %v868_v29 = vmul.f32 %v2195_v62, %v676_v54  ;;  %v657_v43 = vpop.xlane.xlu2 %656  ;;  %v850_v59 = vadd.f32 %v849_v17, %v848_v28 }
 0x1fe   :  { %v1330_v61 = vadd.f32 %v1326_v55, %v1318_v51  ;;  %v871_v0 = vadd.f32 %v867_v13, %v863_v45  ;;  %v870_v51 = vadd.f32 %v866_v58, %v862_v9  ;;  %v418_v62 = vadd.f32 %v2465_v16, %v417_v35 }
 0x1ff   :  { %v1561_v22 = vpop.eup %1560  ;;  %v544_v34 = vpop.xlane.xlu1 %543  ;;  %v833_v49 = vrot.slane %v832_v3, 2  ;;  %v864_v56 = vmul.f32 %v860_v8, %v2185_v4  ;;  %vm387_vm3 = vweird.f32 %v2479_v36  ;;  %vm400_vm11 = vweird.f32 %v2483_v7 }
 0x200   :  { %v1563_v63 = vpop.eup %1562  ;;  %v382_v14 = vmul.f32 %v1561_v22, %v2479_v36  ;;  %v1336_v11 = vsel %vm332_vm2, %v1330_v61, 0.0  ;;  %vm388_vm8 = vweird.f32 %v1561_v22  ;;  %v875_v53 = vsel %vm332_vm2, %v871_v0, 0.0 }
 0x201   :  { %v395_v39 = vmul.f32 %v1563_v63, %v2483_v7  ;;  %v1337_v40 = vadd.f32 %v1336_v11, %v1335_v6  ;;  %v673_v20 = vpop.xlane.xlu0 %672  ;;  %v834_v48 = vadd.f32 %v833_v49, %v832_v3  ;;  %vm401_vm9 = vweird.f32 %v1563_v63  ;;  %vm389_vm10 = vmor %vm387_vm3, %vm388_vm8 }
 0x202   :  { %v383_v55 = vmul.f32 %v1561_v22, %v382_v14  ;;  %v677_v32 = vadd.f32 %v673_v20, %v544_v34  ;;  %v851_v28 = vrot.slane %v850_v59, 1  ;;  %v872_v12 = vadd.f32 %v868_v29, %v864_v56  ;;  %vm402_vm12 = vmor %vm400_vm11, %vm401_vm9 }
 0x203   :  { %v396_v27 = vmul.f32 %v1563_v63, %v395_v39  ;;  %1338 = vadd.xlane.f32.xlu0 %v1337_v40  ;;  %v835_v61 = vrot.slane %v834_v48, 1  ;;  %v420_v36 = vsel %vm419_vm7, %v2465_v16, %v418_v62  ;;  %v874_v34 = vsel %vm332_vm2, %v870_v51, 0.0 }
 0x204   :  { %v384_v10 = vmul.f32 0.5, %v383_v55  ;;  %v857_v2 = vmul.f32 %v2130_v60, %v677_v32  ;;  %v876_v18 = vadd.f32 %v875_v53, %v874_v34  ;;  %v869_v13 = vmul.f32 %v2234_v57, %v677_v32 }
 0x205   :  { %v397_v44 = vmul.f32 0.5, %v396_v27  ;;  %v836_v14 = vadd.f32 %v835_v61, %v834_v48  ;;  %v1193_v49 = vpop.xlane.xlu2 %1192  ;;  %v1024_v16 = vmul.f32 %v1977_v42, %v2297_v1  ;;  %v877_v8 = vsel %vm332_vm2, %v872_v12, 0.0 }
 0x206   :  { %v385_v52 = vsub.f32 1.5, %v384_v10  ;;  %v878_v17 = vadd.f32 %v877_v8, %v876_v18  ;;  %v1042_v42 = vsel %vm434_vm1, %v2272_v46, 0.0  ;;  %v1174_v56 = vsel %vm434_vm1, %v2288_v15, 0.0 }
 0x207   :  { %v528_v54 = vpop.xlane.xlu1 %527  ;;  %v398_v37 = vsub.f32 1.5, %v397_v44  ;;  %v1180_v51 = vsel %vm434_vm1, %v2317_v21, 0.0  ;;  %v1177_v62 = vsel %vm434_vm1, %v2258_v30, 0.0 }
 0x208   :  { %v661_v4 = vadd.f32 %v657_v43, %v528_v54  ;;  %v386_v3 = vmul.f32 %v1561_v22, %v385_v52  ;;  %v1171_v52 = vsel %vm434_vm1, %v2222_v47, 0.0  ;;  %v1023_v54 = vmul.f32 %v1962_v31, %v2281_v50  ;;  %v2657_v31 = vld [vmem:[#allocation8_spill] sm:$0xff] }
 0x209   :  { %v399_v38 = vmul.f32 %v1563_v63, %v398_v37  ;;  %v1064_v6 = vpop.xlane.xlu0 %1063  ;;  %v1154_v50 = vmul.f32 %v2317_v21, %v2657_v31  ;;  %v2660_v31 = vld [vmem:[#allocation12_spill] sm:$0xff] }
 0x20a   :  { %v861_v33 = vsub.f32 %v661_v4, %v857_v2  ;;  %v390_v45 = vsel %vm389_vm10, %v1561_v22, %v386_v3  ;;  %v852_v22 = vadd.f32 %v851_v28, %v850_v59  ;;  %v1203_v35 = vadd.f32 %v1193_v49, %v1064_v6  ;;  %v2656_v2 = vld [vmem:[#allocation5_spill] sm:$0xff] }
 0x20b   :  { %1510 = vpush %v390_v45  ;;  %v403_v60 = vsel %vm402_vm12, %v1563_v63, %v399_v38  ;;  %1156 = vadd.xlane.f32.xlu0 %v1155_v23  ;;  %v1048_v59 = vsel %vm434_vm1, %v2297_v1, 0.0  ;;  %v1029_v37 = vsel %vm434_vm1, %v1023_v54, 0.0  ;;  %v2655_v1 = vld [vmem:[#allocation6_spill] sm:$0xff]  ;;  %v1152_v47 = vmul.f32 %v2288_v15, %v2656_v2  ;;  %v2658_v15 = vld [vmem:[#allocation9_spill] sm:$0xff]  ;;  %v2659_v38 = vld [vmem:[#allocation7_spill] sm:$0xff] }
 0x20c   :  { %v865_v7 = vmul.f32 %v861_v33, %v2228_v24  ;;  %1512 = vpush %v403_v60  ;;  %v1032_v24 = vsel %vm434_vm1, %v1024_v16, 0.0  ;;  %v1347_v0 = vsel %vm332_vm2, %v1203_v35, 0.0  ;;  %v1153_v53 = vmul.f32 %v2258_v30, %v2655_v1 }
 0x20d   :  { %1514 = vpush %v420_v36  ;;  %v1199_v9 = vpop.xlane.xlu2 %1198  ;;  %v1158_v3 = vsel %vm434_vm1, %v1152_v47, 0.0  ;;  %v1164_v30 = vsel %vm434_vm1, %v1154_v50, 0.0  ;;  %v1051_v61 = vsel %vm434_vm1, %v2658_v15, 0.0  ;;  %v1025_v28 = vmul.f32 %v2659_v38, %v2658_v15 }
 0x20e   :  { %1516 = vpush %v836_v14  ;;  %v873_v11 = vadd.f32 %v869_v13, %v865_v7  ;;  %v1161_v4 = vsel %vm434_vm1, %v1153_v53, 0.0 }
 0x20f   :  { %1518 = vpush %v852_v22  ;;  %v1067_v63 = vpop.xlane.xlu1 %1066  ;;  %v1035_v21 = vsel %vm434_vm1, %v1025_v28, 0.0 }
 0x210   :  { %v879_v39 = vsel %vm332_vm2, %v873_v11, 0.0 }
 0x211   :  { %v880_v57 = vadd.f32 %v879_v39, %v878_v17  ;;  %v1196_v40 = vpop.xlane.xlu0 %1195 }
 0x212   :  { %v1204_v20 = vadd.f32 %v1196_v40, %v1067_v63 }
 0x213   :  { %1033 = vadd.xlane.f32.xlu0 %v1032_v24  ;;  %881 = vadd.xlane.f32.xlu2 %v880_v57 }
 0x214   :  { %v1348_v27 = vsel %vm332_vm2, %v1204_v20, 0.0 }
 0x215   :  { %v1349_v58 = vadd.f32 %v1348_v27, %v1347_v0 }
 0x217   :  { %v1070_v55 = vpop.xlane.xlu1 %1069 }
 0x218   :  { %v1205_v29 = vadd.f32 %v1199_v9, %v1070_v55 }
 0x219   :  { %v1073_v10 = vpop.xlane.xlu0 %1072 }
 0x21a   :  { %v1350_v23 = vsel %vm332_vm2, %v1205_v29, 0.0 }
 0x21b   :  { %1043 = vadd.xlane.f32.xlu2 %v1042_v42  ;;  %v1351_v43 = vadd.f32 %v1350_v23, %v1349_v58  ;;  %1181 = vadd.xlane.f32.xlu0 %v1180_v51 }
 0x21f   :  { %v1202_v32 = vpop.xlane.xlu1 %1201 }
 0x220   :  { %v1206_v48 = vadd.f32 %v1202_v32, %v1073_v10 }
 0x221   :  { %v2564_v12 = vpop.xlane.xlu0 %1046 }
 0x222   :  { %v1352_v44 = vsel %vm332_vm2, %v1206_v48, 0.0 }
 0x223   :  { %1175 = vadd.xlane.f32.xlu2 %v1174_v56  ;;  %v1353_v46 = vadd.f32 %v1352_v44, %v1351_v43 }
 0x225   :  { %1354 = vadd.xlane.f32.xlu1 %v1353_v46 }
 0x229   :  { %v2572_v36 = vpop.xlane.xlu0 %1027 }
 0x22b   :  { %1049 = vadd.xlane.f32.xlu2 %v1048_v59 }
 0x22d   :  { %1172 = vadd.xlane.f32.xlu1 %v1171_v52 }
 0x233   :  { %1178 = vadd.xlane.f32.xlu2 %v1177_v62 }
 0x235   :  { %1030 = vadd.xlane.f32.xlu1 %v1029_v37 }
 0x23b   :  { %1162 = vadd.xlane.f32.xlu2 %v1161_v4 }
 0x23c   :  { %s1511_s7 = spop %1510 }
 0x23d   :  { %s405_s23 = smul.f32 %s1511_s7, %s2462_s13  ;;  %s1513_s12 = spop %1512  ;;  %1159 = vadd.xlane.f32.xlu1 %v1158_v3 }
 0x23e   :  { %s411_s3 = smul.f32 %s1511_s7, %s410_s22  ;;  %s2562_s27 = spop %1514 }
 0x23f   :  { %s406_s4 = smul.f32 %s1511_s7, %s405_s23  ;;  %s2566_s5 = spop %1516 }
 0x240   :  { %s407_s24 = smul.f32 %s1513_s12, %s2471_s20  ;;  %s2568_s28 = spop %1518 }
 0x241   :  { %s412_s2 = smul.f32 %s1513_s12, %s411_s3  ;;  %s890_s29 = sadd.f32 1e-12, %s2566_s5 }
 0x242   :  { %s408_s25 = smul.f32 %s1513_s12, %s407_s24  ;;  %s903_s10 = sadd.f32 1e-12, %s2568_s28 }
 0x243   :  { %1165 = vadd.xlane.f32.xlu2 %v1164_v30  ;;  %v891_v33 = vstv %s890_s29  ;;  %v2661_v30 = vld [vmem:[#allocation10_spill] sm:$0xff] }
 0x244   :  { %s409_s11 = sadd.f32 %s408_s25, %s406_s4  ;;  %v904_v45 = vstv %s903_s10  ;;  %1564 = vrsqrt.f32 %v891_v33  ;;  %vm898_vm14 = vweird.f32 %v891_v33 }
 0x245   :  { %1052 = vadd.xlane.f32.xlu1 %v1051_v61  ;;  %1566 = vrsqrt.f32 %v904_v45  ;;  %vm911_vm0 = vweird.f32 %v904_v45 }
 0x246   :  { %s2557_s26 = ssub.f32 %s409_s11, %s412_s2 }
 0x248   :  { %s422_s14 = smul.f32 %s2562_s27, %s2557_s26 }
 0x24a   :  { %v1565_v34 = vpop.eup %1564 }
 0x24b   :  { %v1567_v6 = vpop.eup %1566  ;;  %v893_v18 = vmul.f32 %v1565_v34, %v891_v33  ;;  %vm899_vm1 = vweird.f32 %v1565_v34 }
 0x24c   :  { %v906_v13 = vmul.f32 %v1567_v6, %v904_v45  ;;  %vm912_vm13 = vweird.f32 %v1567_v6  ;;  %vm900_vm15 = vmor %vm898_vm14, %vm899_vm1 }
 0x24d   :  { %1036 = vadd.xlane.f32.xlu1 %v1035_v21  ;;  %v894_v14 = vmul.f32 %v1565_v34, %v893_v18  ;;  %vm913_vm4 = vmor %vm911_vm0, %vm912_vm13  ;;  %v2663_v18 = vld [vmem:[#allocation16_spill] sm:$0xff] }
 0x24e   :  { %v907_v22 = vmul.f32 %v1567_v6, %v906_v13 }
 0x24f   :  { %v895_v11 = vmul.f32 0.5, %v894_v14  ;;  %v2664_v14 = vld [vmem:[#allocation13_spill] sm:$0xff] }
 0x250   :  { %v908_v63 = vmul.f32 0.5, %v907_v22 }
 0x251   :  { %v896_v24 = vsub.f32 1.5, %v895_v11 }
 0x252   :  { %v909_v40 = vsub.f32 1.5, %v908_v63 }
 0x253   :  { %v897_v35 = vmul.f32 %v1565_v34, %v896_v24 }
 0x254   :  { %v910_v29 = vmul.f32 %v1567_v6, %v909_v40 }
 0x255   :  { %v901_v23 = vsel %vm900_vm15, %v1565_v34, %v897_v35 }
 0x256   :  { %v914_v58 = vsel %vm913_vm4, %v1567_v6, %v910_v29  ;;  %v2662_v6 = vld [vmem:[#allocation11_spill] sm:$0xff] }
 0x276   :  { %v1339_v60 = vpop.xlane.xlu0 %1338 }
 0x277   :  { %v1340_v7 = vrot.slane %v1339_v60, 4 }
 0x279   :  { %v1341_v49 = vadd.f32 %v1340_v7, %v1339_v60 }
 0x27b   :  { %v1342_v17 = vrot.slane %v1341_v49, 2 }
 0x27d   :  { %v1343_v9 = vadd.f32 %v1342_v17, %v1341_v49  ;;  %v2666_v17 = vld [vmem:[#allocation15_spill] sm:$0xff] }
 0x27e   :  { %v1157_v54 = vpop.xlane.xlu0 %1156 }
 0x27f   :  { %v1344_v27 = vrot.slane %v1343_v9, 1  ;;  %v1167_v38 = vadd.f32 %v1157_v54, %v2572_v36 }
 0x281   :  { %v1345_v10 = vadd.f32 %v1344_v27, %v1343_v9 }
 0x286   :  { %v882_v16 = vpop.xlane.xlu2 %881  ;;  %v1034_v3 = vpop.xlane.xlu0 %1033 }
 0x287   :  { %v883_v8 = vrot.slane %v882_v16, 4 }
 0x289   :  { %v884_v39 = vadd.f32 %v883_v8, %v882_v16  ;;  %v2665_v16 = vld [vmem:[#allocation14_spill] sm:$0xff] }
 0x28b   :  { %v885_v57 = vrot.slane %v884_v39, 2 }
 0x28d   :  { %v886_v55 = vadd.f32 %v885_v57, %v884_v39 }
 0x28e   :  { %v1044_v20 = vpop.xlane.xlu2 %1043  ;;  %v1182_v13 = vpop.xlane.xlu0 %1181 }
 0x28f   :  { %v887_v42 = vrot.slane %v886_v55, 1 }
 0x291   :  { %v888_v0 = vadd.f32 %v887_v42, %v886_v55 }
 0x293   :  { %1520 = vpush %v888_v0 }
 0x294   :  { %1522 = vpush %v901_v23 }
 0x295   :  { %1524 = vpush %v914_v58 }
 0x296   :  { %1526 = vpush %v1345_v10  ;;  %v1176_v32 = vpop.xlane.xlu2 %1175 }
 0x297   :  { %v1184_v53 = vadd.f32 %v1176_v32, %v2564_v12 }
 0x298   :  { %v1355_v48 = vpop.xlane.xlu1 %1354 }
 0x299   :  { %v1356_v56 = vrot.slane %v1355_v48, 4  ;;  %v1364_v50 = vmul.f32 %v2660_v31, %v1184_v53  ;;  %v1376_v7 = vmul.f32 %v2421_v25, %v1184_v53 }
 0x29b   :  { %v1357_v43 = vadd.f32 %v1356_v56, %v1355_v48 }
 0x29d   :  { %v1358_v44 = vrot.slane %v1357_v43, 2 }
 0x29e   :  { %v1050_v59 = vpop.xlane.xlu2 %1049 }
 0x29f   :  { %v1359_v46 = vadd.f32 %v1358_v44, %v1357_v43 }
 0x2a0   :  { %v1173_v51 = vpop.xlane.xlu1 %1172 }
 0x2a1   :  { %v1360_v52 = vrot.slane %v1359_v46, 1  ;;  %v1183_v2 = vadd.f32 %v1173_v51, %v1044_v20 }
 0x2a3   :  { %v1361_v62 = vadd.f32 %v1360_v52, %v1359_v46  ;;  %v1363_v15 = vmul.f32 %v2661_v30, %v1183_v2  ;;  %v1375_v11 = vmul.f32 %v2665_v16, %v1183_v2 }
 0x2a5   :  { %1528 = vpush %v1361_v62  ;;  %v1367_v33 = vsub.f32 %v1167_v38, %v1363_v15 }
 0x2a6   :  { %v1179_v1 = vpop.xlane.xlu2 %1178 }
 0x2a7   :  { %v1185_v28 = vadd.f32 %v1179_v1, %v1050_v59  ;;  %v1371_v22 = vmul.f32 %v1367_v33, %v2664_v14 }
 0x2a8   :  { %v1031_v37 = vpop.xlane.xlu1 %1030 }
 0x2a9   :  { %v1365_v60 = vmul.f32 %v2662_v6, %v1185_v28  ;;  %v1379_v36 = vadd.f32 %v1375_v11, %v1371_v22  ;;  %v1377_v40 = vmul.f32 %v2433_v19, %v1185_v28 }
 0x2ab   :  { %v1383_v35 = vsel %vm332_vm2, %v1379_v36, 0.0 }
 0x2ae   :  { %v1163_v61 = vpop.xlane.xlu2 %1162 }
 0x2af   :  { %v1169_v45 = vadd.f32 %v1163_v61, %v1034_v3 }
 0x2b0   :  { %v1160_v47 = vpop.xlane.xlu1 %1159 }
 0x2b1   :  { %v1168_v4 = vadd.f32 %v1160_v47, %v1031_v37  ;;  %v1369_v49 = vsub.f32 %v1169_v45, %v1365_v60 }
 0x2b3   :  { %v1368_v21 = vsub.f32 %v1168_v4, %v1364_v50  ;;  %v1373_v39 = vmul.f32 %v1369_v49, %v2666_v17 }
 0x2b5   :  { %v1372_v12 = vmul.f32 %v1368_v21, %v2663_v18  ;;  %v1381_v42 = vadd.f32 %v1377_v40, %v1373_v39 }
 0x2b6   :  { %v1166_v57 = vpop.xlane.xlu2 %1165 }
 0x2b7   :  { %v1380_v8 = vadd.f32 %v1376_v7, %v1372_v12  ;;  %v1386_v19 = vsel %vm332_vm2, %v1381_v42, 0.0 }
 0x2b8   :  { %v1053_v34 = vpop.xlane.xlu1 %1052 }
 0x2b9   :  { %v1186_v63 = vadd.f32 %v1182_v13, %v1053_v34  ;;  %v1384_v25 = vsel %vm332_vm2, %v1380_v8, 0.0 }
 0x2ba   :  { %v1385_v29 = vadd.f32 %v1384_v25, %v1383_v35 }
 0x2bb   :  { %v1366_v9 = vmul.f32 %v2370_v41, %v1186_v63  ;;  %v1378_v27 = vmul.f32 %v2460_v26, %v1186_v63 }
 0x2bc   :  { %v1387_v23 = vadd.f32 %v1386_v19, %v1385_v29 }
 0x2c0   :  { %v1037_v24 = vpop.xlane.xlu1 %1036 }
 0x2c1   :  { %v1170_v55 = vadd.f32 %v1166_v57, %v1037_v24 }
 0x2c3   :  { %v1370_v20 = vsub.f32 %v1170_v55, %v1366_v9 }
 0x2c4   :  { %s1521_s30 = spop %1520 }
 0x2c5   :  { %v1374_v0 = vmul.f32 %v1370_v20, %v2455_v5  ;;  %s921_s16 = smul.f32 2.0, %s1521_s30  ;;  %s1523_s17 = spop %1522 }
 0x2c6   :  { %s916_s18 = smul.f32 %s1523_s17, %s2566_s5  ;;  %s1525_s0 = spop %1524 }
 0x2c7   :  { %s922_s8 = smul.f32 %s1523_s17, %s921_s16  ;;  %v1382_v41 = vadd.f32 %v1378_v27, %v1374_v0  ;;  %s2599_s7 = spop %1526 }
 0x2c8   :  { %s917_s1 = smul.f32 %s1523_s17, %s916_s18  ;;  %s1399_s12 = sadd.f32 1e-12, %s2599_s7 }
 0x2c9   :  { %s918_s9 = smul.f32 %s1525_s0, %s2568_s28  ;;  %v1388_v58 = vsel %vm332_vm2, %v1382_v41, 0.0 }
 0x2ca   :  { %s923_s6 = smul.f32 %s1525_s0, %s922_s8  ;;  %v1389_v26 = vadd.f32 %v1388_v58, %v1387_v23  ;;  %v1400_v5 = vstv %s1399_s12  ;;  %s1452_s8 = sshll.u32 %s2627_s15, 4  ;;  %s1453_s8 = int_to_ptr.hbm [resolvable:$true] %s1452_s8 }
 0x2cb   :  { %s919_s13 = smul.f32 %s1525_s0, %s918_s9  ;;  %1568 = vrsqrt.f32 %v1400_v5  ;;  %vm1407_vm6 = vweird.f32 %v1400_v5 }
 0x2cc   :  { %1390 = vadd.xlane.f32.xlu0 %v1389_v26 }
 0x2cd   :  { %s920_s19 = sadd.f32 %s919_s13, %s917_s1 }
 0x2cf   :  { %s924_s20 = ssub.f32 %s920_s19, %s923_s6  ;;  %s1587_s6 = smov [#allocation2]  }
 0x2d1   :  { %s933_s21 = smul.f32 %s2562_s27, %s924_s20  ;;  %v1569_v32 = vpop.eup %1568 }
 0x2d2   :  { %v1402_v56 = vmul.f32 %v1569_v32, %v1400_v5  ;;  %vm1408_vm2 = vweird.f32 %v1569_v32 }
 0x2d3   :  { %s2597_s22 = sadd.f32 %s933_s21, %s422_s14  ;;  %vm1409_vm7 = vmor %vm1407_vm6, %vm1408_vm2 }
 0x2d4   :  { %v1403_v44 = vmul.f32 %v1569_v32, %v1402_v56 }
 0x2d6   :  { %s2601_s23 = spop %1528  ;;  %v1404_v51 = vmul.f32 0.5, %v1403_v44 }
 0x2d7   :  { %s1412_s3 = sadd.f32 1e-12, %s2601_s23 }
 0x2d8   :  { %v1405_v1 = vsub.f32 1.5, %v1404_v51 }
 0x2d9   :  { %v1413_v10 = vstv %s1412_s3 }
 0x2da   :  { %1570 = vrsqrt.f32 %v1413_v10  ;;  %v1406_v4 = vmul.f32 %v1569_v32, %v1405_v1  ;;  %vm1420_vm8 = vweird.f32 %v1413_v10 }
 0x2dc   :  { %v1410_v50 = vsel %vm1409_vm7, %v1569_v32, %v1406_v4 }
 0x2e0   :  { %v1571_v48 = vpop.eup %1570 }
 0x2e1   :  { %v1415_v43 = vmul.f32 %v1571_v48, %v1413_v10  ;;  %vm1421_vm5 = vweird.f32 %v1571_v48 }
 0x2e2   :  { %vm1422_vm3 = vmor %vm1420_vm8, %vm1421_vm5 }
 0x2e3   :  { %v1416_v46 = vmul.f32 %v1571_v48, %v1415_v43 }
 0x2e5   :  { %v1417_v62 = vmul.f32 0.5, %v1416_v46 }
 0x2e7   :  { %v1418_v53 = vsub.f32 1.5, %v1417_v62 }
 0x2e9   :  { %v1419_v3 = vmul.f32 %v1571_v48, %v1418_v53 }
 0x2eb   :  { %v1423_v30 = vsel %vm1422_vm3, %v1571_v48, %v1419_v3 }
 0x33f   :  { %v1391_v59 = vpop.xlane.xlu0 %1390 }
 0x340   :  { %v1392_v52 = vrot.slane %v1391_v59, 4 }
 0x342   :  { %v1393_v54 = vadd.f32 %v1392_v52, %v1391_v59 }
 0x344   :  { %v1394_v37 = vrot.slane %v1393_v54, 2 }
 0x346   :  { %v1395_v2 = vadd.f32 %v1394_v37, %v1393_v54 }
 0x348   :  { %v1396_v47 = vrot.slane %v1395_v2, 1 }
 0x34a   :  { %v1397_v31 = vadd.f32 %v1396_v47, %v1395_v2 }
 0x34c   :  { %1530 = vpush %v1397_v31 }
 0x34d   :  { %1532 = vpush %v1410_v50 }
 0x34e   :  { %1534 = vpush %v1423_v30 }
 0x37d   :  { %s1531_s4 = spop %1530 }
 0x37e   :  { %s1430_s24 = smul.f32 2.0, %s1531_s4  ;;  %s1533_s2 = spop %1532 }
 0x37f   :  { %s1425_s25 = smul.f32 %s1533_s2, %s2599_s7  ;;  %s1535_s11 = spop %1534 }
 0x380   :  { %s1431_s26 = smul.f32 %s1533_s2, %s1430_s24 }
 0x381   :  { %s1426_s5 = smul.f32 %s1533_s2, %s1425_s25 }
 0x382   :  { %s1427_s28 = smul.f32 %s1535_s11, %s2601_s23 }
 0x383   :  { %s1432_s29 = smul.f32 %s1535_s11, %s1431_s26 }
 0x384   :  { %s1428_s10 = smul.f32 %s1535_s11, %s1427_s28 }
 0x386   :  { %s1429_s30 = sadd.f32 %s1428_s10, %s1426_s5 }
 0x388   :  { %s1433_s16 = ssub.f32 %s1429_s30, %s1432_s29 }
 0x38a   :  { %s1442_s17 = smul.f32 %s2562_s27, %s1433_s16 }
 0x38c   :  { %s1443_s1 = sadd.f32 %s1442_s17, %s2597_s22 }
 0x38e   :  { %s1444_s9 = smul.f32 0.5, %s1443_s1 }
 0x390   :  { %1446 = sst [smem:[#allocation2]] %s1444_s9 }
 0x391   :  { %1455 = dma.smem_to_hbm %s1587_s6, 16, %s1453_s8, [#allocation3]  }
 0x392   :  { %1584 = dma.done.wait [#allocation3], 16  }
 0x393   :  { %1585 = vsyncadd [#allocation3], 4294967280 }
 0x394   :  { %1460 = sfence }
 0x395   :  { %1461 = vsyncpa [#allocation3], 1 }

</bundles_post_ra>
